<compile_context>
chip_gen: v7x
topology: tpu7x:2x2x1
jax: 0.10.0
libtpu: 0.0.40
codegen_flags: <defaults>
</compile_context>

<pallas_src>
import jax
import jax.numpy as jnp
from jax.experimental import pallas as pl
from jax.experimental.pallas import tpu as pltpu


# ---------------------------------------------------------------------------
# Fused Bottleneck kernel (one grid step == one batch element)
# ---------------------------------------------------------------------------
def _make_bottleneck_kernel(H, W, cb, pad0):
    HW = H * W
    w_pow2 = (W & (W - 1)) == 0

    def kernel(x_ref, w1_ref, b1_ref, w2_ref, b2_ref, w3_ref, b3_ref,
               o_ref, pad_ref):
        # ---- conv1 (1x1) + folded bn1 + relu --------------------------------
        # Cast once for the MXU; the f32 residual is re-read from VMEM in the
        # epilogue instead of being held live across the whole kernel.
        xb = x_ref[...].astype(jnp.bfloat16)
        t1 = jnp.dot(xb, w1_ref[...], preferred_element_type=jnp.float32)
        t1 = jnp.maximum(t1 + b1_ref[...], 0.0)              # [HW, cb] f32

        # ---- stage conv2 input: flat sublane-padded scratch -----------------
        # pad_ref is [pad0 + HW + pad0, cb]. Only the small border strips are
        # zeroed (every step -> correct under megacore grid splitting); the
        # interior is fully overwritten each step with an aligned store.
        zero_strip = jnp.zeros((pad0, cb), jnp.float32)
        pad_ref[pl.ds(0, pad0), :] = zero_strip
        pad_ref[pl.ds(pad0 + HW, pad0), :] = zero_strip
        pad_ref[pl.ds(pad0, HW), :] = t1

        # Column-boundary masks. Row out-of-bounds is handled by the zero
        # strips; only the flattened-row wrap (one column) needs masking.
        idx = jax.lax.broadcasted_iota(jnp.int32, (HW, cb), 0)
        col = jnp.bitwise_and(idx, W - 1) if w_pow2 else idx - (idx // W) * W
        not_first_col = col > 0
        not_last_col = col < (W - 1)

        # ---- conv2 (3x3, pad=1, stride=1) as ONE K=9*cb MXU matmul ----------
        # 9 shifted windows = contiguous 2-D slices of the flat padded scratch
        # (no 3-D window reshape / relayout copies), masked on the column
        # wrap, cast to bf16 and lane-concatenated into one [HW, 9*cb] operand
        # so the whole 3x3 conv is a single dot against w2 ([9*cb, cb]).
        wins = []
        for dy in range(3):
            for dx in range(3):
                s = (dy - 1) * W + (dx - 1)
                win = pad_ref[pl.ds(pad0 + s, HW), :]        # [HW, cb] f32
                if dx == 0:
                    win = jnp.where(not_first_col, win, 0.0)
                elif dx == 2:
                    win = jnp.where(not_last_col, win, 0.0)
                wins.append(win.astype(jnp.bfloat16))
        patch = jnp.concatenate(wins, axis=-1)               # [HW, 9*cb] bf16
        t2 = jnp.dot(patch, w2_ref[...], preferred_element_type=jnp.float32)
        t2 = jnp.maximum(t2 + b2_ref[...], 0.0)              # [HW, cb] f32

        # ---- conv3 (1x1) + folded bn3 + residual(x) + relu ------------------
        out = jnp.dot(t2.astype(jnp.bfloat16), w3_ref[...],
                      preferred_element_type=jnp.float32)
        out = jnp.maximum(out + b3_ref[...] + x_ref[...], 0.0)
        o_ref[...] = out.astype(o_ref.dtype)

    return kernel


# ---------------------------------------------------------------------------
# NHWC-native wrapper (preferred: no layout transposes, reshapes are
# metadata-only because channels are already minor-most)
# ---------------------------------------------------------------------------
def bottleneck_forward_nhwc(params, x_nhwc):
    N, H, W, cin = x_nhwc.shape
    cb = params["w1"].shape[1]
    cout = params["w3"].shape[1]
    assert cin == cout, "default residual=x path requires inplanes == planes"
    HW = H * W
    # Leading pad rounded to a sublane multiple so the interior store is
    # aligned; it must cover the largest tap shift (W + 1).
    pad0 = ((W + 1 + 7) // 8) * 8

    x2d = x_nhwc.reshape(N, HW, cin)                         # metadata-only

    out2d = pl.pallas_call(
        _make_bottleneck_kernel(H, W, cb, pad0),
        out_shape=jax.ShapeDtypeStruct((N, HW, cout), jnp.float32),
        grid=(N,),
        in_specs=[
            pl.BlockSpec((None, HW, cin), lambda n: (n, 0, 0)),   # x
            pl.BlockSpec((cin, cb), lambda n: (0, 0)),            # w1 (bn1 folded)
            pl.BlockSpec((1, cb), lambda n: (0, 0)),              # b1
            pl.BlockSpec((9 * cb, cb), lambda n: (0, 0)),         # w2 (bn2 folded)
            pl.BlockSpec((1, cb), lambda n: (0, 0)),              # b2
            pl.BlockSpec((cb, cout), lambda n: (0, 0)),           # w3 (bn3 folded)
            pl.BlockSpec((1, cout), lambda n: (0, 0)),            # b3
        ],
        out_specs=pl.BlockSpec((None, HW, cout), lambda n: (n, 0, 0)),
        scratch_shapes=[pltpu.VMEM((2 * pad0 + HW, cb), jnp.float32)],
        compiler_params=pltpu.CompilerParams(
            dimension_semantics=("parallel",),
            vmem_limit_bytes=32 * 1024 * 1024),
    )(x2d, params["w1"], params["b1"], params["w2"], params["b2"],
      params["w3"], params["b3"])

    return out2d.reshape(N, H, W, cout)                      # metadata-only


# ---------------------------------------------------------------------------
# NCHW compatibility wrapper (matches the PyTorch module's interface).
# NOTE: the two jnp.transpose calls are REAL HBM copies, not metadata; in a
# full network keep activations NHWC and call bottleneck_forward_nhwc.
# ---------------------------------------------------------------------------
def bottleneck_forward(params, x_nchw):
    x_nhwc = jnp.transpose(x_nchw, (0, 2, 3, 1))
    y_nhwc = bottleneck_forward_nhwc(params, x_nhwc)
    return jnp.transpose(y_nhwc, (0, 3, 1, 2))


# ---------------------------------------------------------------------------
# Parameters (deterministic, inference-mode BN folded into the weights)
# ---------------------------------------------------------------------------
def _bn_fold(key, c):
    k1, k2, k3, k4 = jax.random.split(key, 4)
    gamma = 1.0 + 0.1 * jax.random.normal(k1, (c,), jnp.float32)
    beta = 0.1 * jax.random.normal(k2, (c,), jnp.float32)
    mean = 0.1 * jax.random.normal(k3, (c,), jnp.float32)
    var = 1.0 + 0.1 * jax.random.uniform(k4, (c,), jnp.float32)
    scale = gamma * jax.lax.rsqrt(var + 1e-5)
    bias = beta - mean * scale
    return scale, bias


def init_bottleneck_params(key, inplanes, planes):
    expansion = 2
    cb = planes // expansion
    ks = jax.random.split(key, 6)
    w1 = jax.random.normal(ks[0], (inplanes, cb), jnp.float32) / jnp.sqrt(inplanes * 1.0)
    s1, b1 = _bn_fold(ks[1], cb)
    w2 = jax.random.normal(ks[2], (3, 3, cb, cb), jnp.float32) / jnp.sqrt(9.0 * cb)
    s2, b2 = _bn_fold(ks[3], cb)
    w3 = jax.random.normal(ks[4], (cb, planes), jnp.float32) / jnp.sqrt(cb * 1.0)
    s3, b3 = _bn_fold(ks[5], planes)
    return {
        "w1": (w1 * s1[None, :]).astype(jnp.bfloat16),
        "b1": b1.reshape(1, cb),
        # w2 stored pre-flattened to [9*cb, cb] (tap-major, HWIO row-major) so
        # conv2 is a single K=9*cb matmul in the kernel.
        "w2": (w2 * s2[None, None, None, :]).reshape(9 * cb, cb).astype(jnp.bfloat16),
        "b2": b2.reshape(1, cb),
        "w3": (w3 * s3[None, :]).astype(jnp.bfloat16),
        "b3": b3.reshape(1, planes),
    }


# ---------------------------------------------------------------------------
# Pure-JAX reference (same folded weights, f32 math) for a sanity check
# ---------------------------------------------------------------------------
def bottleneck_reference(params, x_nchw):
    cb = params["w1"].shape[1]
    x = jnp.transpose(x_nchw, (0, 2, 3, 1)).astype(jnp.float32)   # NHWC
    t = jax.nn.relu(x @ params["w1"].astype(jnp.float32) + params["b1"][0])
    w2 = params["w2"].astype(jnp.float32).reshape(3, 3, cb, cb)   # back to HWIO
    t = jax.lax.conv_general_dilated(
        t, w2, window_strides=(1, 1), padding="SAME",
        dimension_numbers=("NHWC", "HWIO", "NHWC"))
    t = jax.nn.relu(t + params["b2"][0])
    out = jax.nn.relu(t @ params["w3"].astype(jnp.float32) + params["b3"][0] + x)
    return jnp.transpose(out, (0, 3, 1, 2))


# ---------------------------------------------------------------------------
if __name__ == "__main__":
    # inplanes == planes so the default residual = x path is valid.
    N, C, H, W = 2, 64, 16, 16

    key = jax.random.PRNGKey(0)
    kx, kp = jax.random.split(key)
    x_nchw = jax.random.normal(kx, (N, C, H, W), jnp.float32)   # PyTorch-style input
    params = init_bottleneck_params(kp, inplanes=C, planes=C)

    out = jax.jit(bottleneck_forward)(params, x_nchw)
    jax.block_until_ready(out)

    ref = bottleneck_reference(params, x_nchw)
    err = float(jnp.max(jnp.abs(out - ref)))

    assert out.shape == (N, C, H, W), out.shape
    assert bool(jnp.all(jnp.isfinite(out)))
    assert err < 2e-1, f"mismatch vs reference (bf16 matmuls): {err}"
    print("KERNEL_OK")
</pallas_src>

<mosaic_0001>
module attributes {stable_mosaic.version = 11 : i64} {
  func.func @kernel(%arg0: i32, %arg1: memref<1x256x64xf32, #tpu.memory_space<vmem>>, %arg2: memref<64x32xbf16, #tpu.memory_space<vmem>>, %arg3: memref<1x32xf32, #tpu.memory_space<vmem>>, %arg4: memref<288x32xbf16, #tpu.memory_space<vmem>>, %arg5: memref<1x32xf32, #tpu.memory_space<vmem>>, %arg6: memref<32x64xbf16, #tpu.memory_space<vmem>>, %arg7: memref<1x64xf32, #tpu.memory_space<vmem>>, %arg8: memref<1x256x64xf32, #tpu.memory_space<vmem>>, %arg9: memref<304x32xf32, #tpu.memory_space<vmem>>) attributes {dimension_semantics = [#tpu.dimension_semantics<parallel>], iteration_bounds = array<i64: 2>, scalar_prefetch = 0 : i64, scratch_operands = 1 : i64, tpu.core_type = #tpu.core_type<tc>, window_params = [{transform_indices = @transform_0, window_bounds = array<i64: 1, 256, 64>}, {pipeline_mode = #tpu.pipeline_mode<synchronous>, transform_indices = @transform_1, window_bounds = array<i64: 64, 32>}, {pipeline_mode = #tpu.pipeline_mode<synchronous>, transform_indices = @transform_2, window_bounds = array<i64: 1, 32>}, {pipeline_mode = #tpu.pipeline_mode<synchronous>, transform_indices = @transform_3, window_bounds = array<i64: 288, 32>}, {pipeline_mode = #tpu.pipeline_mode<synchronous>, transform_indices = @transform_4, window_bounds = array<i64: 1, 32>}, {pipeline_mode = #tpu.pipeline_mode<synchronous>, transform_indices = @transform_5, window_bounds = array<i64: 32, 64>}, {pipeline_mode = #tpu.pipeline_mode<synchronous>, transform_indices = @transform_6, window_bounds = array<i64: 1, 64>}, {transform_indices = @transform_7, window_bounds = array<i64: 1, 256, 64>}]} {
    %c0 = arith.constant 0 : index
    %c0_0 = arith.constant 0 : index
    %c0_1 = arith.constant 0 : index
    %0 = vector.load %arg1[%c0, %c0_0, %c0_1] : memref<1x256x64xf32, #tpu.memory_space<vmem>>, vector<1x256x64xf32>
    %1 = vector.shape_cast %0 : vector<1x256x64xf32> to vector<256x64xf32>
    %2 = arith.truncf %1 : vector<256x64xf32> to vector<256x64xbf16>
    %c0_2 = arith.constant 0 : index
    %c0_3 = arith.constant 0 : index
    %3 = vector.load %arg2[%c0_2, %c0_3] : memref<64x32xbf16, #tpu.memory_space<vmem>>, vector<64x32xbf16>
    %cst = arith.constant dense<0.000000e+00> : vector<256x32xf32>
    %4 = tpu.matmul %2, %3, %cst {dimension_numbers = #tpu.dot_dimension_numbers<[1], [0], [0], [1], [0, 0, 1, 1], [], []>} : vector<256x64xbf16>, vector<64x32xbf16>, vector<256x32xf32> -> vector<256x32xf32>
    %c0_4 = arith.constant 0 : index
    %c0_5 = arith.constant 0 : index
    %5 = vector.load %arg3[%c0_4, %c0_5] : memref<1x32xf32, #tpu.memory_space<vmem>>, vector<1x32xf32>
    %6 = vector.broadcast %5 : vector<1x32xf32> to vector<256x32xf32>
    %7 = arith.addf %4, %6 : vector<256x32xf32>
    %cst_6 = arith.constant 0.000000e+00 : f32
    %8 = vector.broadcast %cst_6 : f32 to vector<256x32xf32>
    %9 = arith.maximumf %7, %8 : vector<256x32xf32>
    %cst_7 = arith.constant 0.000000e+00 : f32
    %10 = vector.broadcast %cst_7 : f32 to vector<24x32xf32>
    %c0_8 = arith.constant 0 : index
    %c0_9 = arith.constant 0 : index
    %11 = vector.load %arg9[%c0_8, %c0_9] : memref<304x32xf32, #tpu.memory_space<vmem>>, vector<24x32xf32>
    tpu.vector_store %arg9[%c0_8, %c0_9], %10 {strides = array<i32>} : memref<304x32xf32, #tpu.memory_space<vmem>>, vector<24x32xf32>,
    %c280 = arith.constant 280 : index
    %c0_10 = arith.constant 0 : index
    %12 = vector.load %arg9[%c280, %c0_10] : memref<304x32xf32, #tpu.memory_space<vmem>>, vector<24x32xf32>
    tpu.vector_store %arg9[%c280, %c0_10], %10 {strides = array<i32>} : memref<304x32xf32, #tpu.memory_space<vmem>>, vector<24x32xf32>,
    %c24 = arith.constant 24 : index
    %c0_11 = arith.constant 0 : index
    %13 = vector.load %arg9[%c24, %c0_11] : memref<304x32xf32, #tpu.memory_space<vmem>>, vector<256x32xf32>
    tpu.vector_store %arg9[%c24, %c0_11], %9 {strides = array<i32>} : memref<304x32xf32, #tpu.memory_space<vmem>>, vector<256x32xf32>,
    %14 = tpu.iota {dimensions = array<i32: 0>} : vector<256x32xi32>
    %c15_i32 = arith.constant 15 : i32
    %15 = vector.broadcast %c15_i32 : i32 to vector<256x32xi32>
    %16 = arith.andi %14, %15 : vector<256x32xi32>
    %c0_i32 = arith.constant 0 : i32
    %17 = vector.broadcast %c0_i32 : i32 to vector<256x32xi32>
    %18 = arith.cmpi sgt, %16, %17 : vector<256x32xi32>
    %c15_i32_12 = arith.constant 15 : i32
    %19 = vector.broadcast %c15_i32_12 : i32 to vector<256x32xi32>
    %20 = arith.cmpi slt, %16, %19 : vector<256x32xi32>
    %c7 = arith.constant 7 : index
    %c0_13 = arith.constant 0 : index
    %21 = vector.load %arg9[%c7, %c0_13] : memref<304x32xf32, #tpu.memory_space<vmem>>, vector<256x32xf32>
    %cst_14 = arith.constant 0.000000e+00 : f32
    %22 = vector.broadcast %cst_14 : f32 to vector<256x32xf32>
    %23 = arith.select %18, %21, %22 : vector<256x32xi1>, vector<256x32xf32>
    %24 = arith.truncf %23 : vector<256x32xf32> to vector<256x32xbf16>
    %c8 = arith.constant 8 : index
    %c0_15 = arith.constant 0 : index
    %25 = vector.load %arg9[%c8, %c0_15] : memref<304x32xf32, #tpu.memory_space<vmem>>, vector<256x32xf32>
    %26 = arith.truncf %25 : vector<256x32xf32> to vector<256x32xbf16>
    %c9 = arith.constant 9 : index
    %c0_16 = arith.constant 0 : index
    %27 = vector.load %arg9[%c9, %c0_16] : memref<304x32xf32, #tpu.memory_space<vmem>>, vector<256x32xf32>
    %cst_17 = arith.constant 0.000000e+00 : f32
    %28 = vector.broadcast %cst_17 : f32 to vector<256x32xf32>
    %29 = arith.select %20, %27, %28 : vector<256x32xi1>, vector<256x32xf32>
    %30 = arith.truncf %29 : vector<256x32xf32> to vector<256x32xbf16>
    %c23 = arith.constant 23 : index
    %c0_18 = arith.constant 0 : index
    %31 = vector.load %arg9[%c23, %c0_18] : memref<304x32xf32, #tpu.memory_space<vmem>>, vector<256x32xf32>
    %cst_19 = arith.constant 0.000000e+00 : f32
    %32 = vector.broadcast %cst_19 : f32 to vector<256x32xf32>
    %33 = arith.select %18, %31, %32 : vector<256x32xi1>, vector<256x32xf32>
    %34 = arith.truncf %33 : vector<256x32xf32> to vector<256x32xbf16>
    %c24_20 = arith.constant 24 : index
    %c0_21 = arith.constant 0 : index
    %35 = vector.load %arg9[%c24_20, %c0_21] : memref<304x32xf32, #tpu.memory_space<vmem>>, vector<256x32xf32>
    %36 = arith.truncf %35 : vector<256x32xf32> to vector<256x32xbf16>
    %c25 = arith.constant 25 : index
    %c0_22 = arith.constant 0 : index
    %37 = vector.load %arg9[%c25, %c0_22] : memref<304x32xf32, #tpu.memory_space<vmem>>, vector<256x32xf32>
    %cst_23 = arith.constant 0.000000e+00 : f32
    %38 = vector.broadcast %cst_23 : f32 to vector<256x32xf32>
    %39 = arith.select %20, %37, %38 : vector<256x32xi1>, vector<256x32xf32>
    %40 = arith.truncf %39 : vector<256x32xf32> to vector<256x32xbf16>
    %c39 = arith.constant 39 : index
    %c0_24 = arith.constant 0 : index
    %41 = vector.load %arg9[%c39, %c0_24] : memref<304x32xf32, #tpu.memory_space<vmem>>, vector<256x32xf32>
    %cst_25 = arith.constant 0.000000e+00 : f32
    %42 = vector.broadcast %cst_25 : f32 to vector<256x32xf32>
    %43 = arith.select %18, %41, %42 : vector<256x32xi1>, vector<256x32xf32>
    %44 = arith.truncf %43 : vector<256x32xf32> to vector<256x32xbf16>
    %c40 = arith.constant 40 : index
    %c0_26 = arith.constant 0 : index
    %45 = vector.load %arg9[%c40, %c0_26] : memref<304x32xf32, #tpu.memory_space<vmem>>, vector<256x32xf32>
    %46 = arith.truncf %45 : vector<256x32xf32> to vector<256x32xbf16>
    %c41 = arith.constant 41 : index
    %c0_27 = arith.constant 0 : index
    %47 = vector.load %arg9[%c41, %c0_27] : memref<304x32xf32, #tpu.memory_space<vmem>>, vector<256x32xf32>
    %cst_28 = arith.constant 0.000000e+00 : f32
    %48 = vector.broadcast %cst_28 : f32 to vector<256x32xf32>
    %49 = arith.select %20, %47, %48 : vector<256x32xi1>, vector<256x32xf32>
    %50 = arith.truncf %49 : vector<256x32xf32> to vector<256x32xbf16>
    %51 = tpu.concatenate %24, %26, %30, %34, %36, %40, %44, %46, %50 in 1 : vector<256x32xbf16>, vector<256x32xbf16>, vector<256x32xbf16>, vector<256x32xbf16>, vector<256x32xbf16>, vector<256x32xbf16>, vector<256x32xbf16>, vector<256x32xbf16>, vector<256x32xbf16> -> vector<256x288xbf16>
    %c0_29 = arith.constant 0 : index
    %c0_30 = arith.constant 0 : index
    %52 = vector.load %arg4[%c0_29, %c0_30] : memref<288x32xbf16, #tpu.memory_space<vmem>>, vector<288x32xbf16>
    %cst_31 = arith.constant dense<0.000000e+00> : vector<256x32xf32>
    %53 = tpu.matmul %51, %52, %cst_31 {dimension_numbers = #tpu.dot_dimension_numbers<[1], [0], [0], [1], [0, 0, 1, 1], [], []>} : vector<256x288xbf16>, vector<288x32xbf16>, vector<256x32xf32> -> vector<256x32xf32>
    %c0_32 = arith.constant 0 : index
    %c0_33 = arith.constant 0 : index
    %54 = vector.load %arg5[%c0_32, %c0_33] : memref<1x32xf32, #tpu.memory_space<vmem>>, vector<1x32xf32>
    %55 = vector.broadcast %54 : vector<1x32xf32> to vector<256x32xf32>
    %56 = arith.addf %53, %55 : vector<256x32xf32>
    %cst_34 = arith.constant 0.000000e+00 : f32
    %57 = vector.broadcast %cst_34 : f32 to vector<256x32xf32>
    %58 = arith.maximumf %56, %57 : vector<256x32xf32>
    %59 = arith.truncf %58 : vector<256x32xf32> to vector<256x32xbf16>
    %c0_35 = arith.constant 0 : index
    %c0_36 = arith.constant 0 : index
    %60 = vector.load %arg6[%c0_35, %c0_36] : memref<32x64xbf16, #tpu.memory_space<vmem>>, vector<32x64xbf16>
    %cst_37 = arith.constant dense<0.000000e+00> : vector<256x64xf32>
    %61 = tpu.matmul %59, %60, %cst_37 {dimension_numbers = #tpu.dot_dimension_numbers<[1], [0], [0], [1], [0, 0, 1, 1], [], []>} : vector<256x32xbf16>, vector<32x64xbf16>, vector<256x64xf32> -> vector<256x64xf32>
    %c0_38 = arith.constant 0 : index
    %c0_39 = arith.constant 0 : index
    %62 = vector.load %arg7[%c0_38, %c0_39] : memref<1x64xf32, #tpu.memory_space<vmem>>, vector<1x64xf32>
    %63 = vector.broadcast %62 : vector<1x64xf32> to vector<256x64xf32>
    %64 = arith.addf %61, %63 : vector<256x64xf32>
    %c0_40 = arith.constant 0 : index
    %c0_41 = arith.constant 0 : index
    %c0_42 = arith.constant 0 : index
    %65 = vector.load %arg1[%c0_40, %c0_41, %c0_42] : memref<1x256x64xf32, #tpu.memory_space<vmem>>, vector<1x256x64xf32>
    %66 = vector.shape_cast %65 : vector<1x256x64xf32> to vector<256x64xf32>
    %67 = arith.addf %64, %66 : vector<256x64xf32>
    %cst_43 = arith.constant 0.000000e+00 : f32
    %68 = vector.broadcast %cst_43 : f32 to vector<256x64xf32>
    %69 = arith.maximumf %67, %68 : vector<256x64xf32>
    %c0_44 = arith.constant 0 : index
    %c0_45 = arith.constant 0 : index
    %c0_46 = arith.constant 0 : index
    %70 = vector.load %arg8[%c0_44, %c0_45, %c0_46] : memref<1x256x64xf32, #tpu.memory_space<vmem>>, vector<1x256x64xf32>
    %71 = vector.shape_cast %70 : vector<1x256x64xf32> to vector<256x64xf32>
    %72 = vector.shape_cast %69 : vector<256x64xf32> to vector<1x256x64xf32>
    tpu.vector_store %arg8[%c0_44, %c0_45, %c0_46], %72 {strides = array<i32>} : memref<1x256x64xf32, #tpu.memory_space<vmem>>, vector<1x256x64xf32>,
    return
  }
  func.func @transform_0(%arg0: i32) -> (i32, i32, i32) {
    %c0_i32 = arith.constant 0 : i32
    %c0_i32_0 = arith.constant 0 : i32
    %c0_i32_1 = arith.constant 0 : i32
    return %arg0, %c0_i32, %c0_i32_0 : i32, i32, i32
  }
  func.func @transform_1(%arg0: i32) -> (i32, i32) {
    %c0_i32 = arith.constant 0 : i32
    %c0_i32_0 = arith.constant 0 : i32
    %c0_i32_1 = arith.constant 0 : i32
    return %c0_i32, %c0_i32_0 : i32, i32
  }
  func.func @transform_2(%arg0: i32) -> (i32, i32) {
    %c0_i32 = arith.constant 0 : i32
    %c0_i32_0 = arith.constant 0 : i32
    %c0_i32_1 = arith.constant 0 : i32
    return %c0_i32, %c0_i32_0 : i32, i32
  }
  func.func @transform_3(%arg0: i32) -> (i32, i32) {
    %c0_i32 = arith.constant 0 : i32
    %c0_i32_0 = arith.constant 0 : i32
    %c0_i32_1 = arith.constant 0 : i32
    return %c0_i32, %c0_i32_0 : i32, i32
  }
  func.func @transform_4(%arg0: i32) -> (i32, i32) {
    %c0_i32 = arith.constant 0 : i32
    %c0_i32_0 = arith.constant 0 : i32
    %c0_i32_1 = arith.constant 0 : i32
    return %c0_i32, %c0_i32_0 : i32, i32
  }
  func.func @transform_5(%arg0: i32) -> (i32, i32) {
    %c0_i32 = arith.constant 0 : i32
    %c0_i32_0 = arith.constant 0 : i32
    %c0_i32_1 = arith.constant 0 : i32
    return %c0_i32, %c0_i32_0 : i32, i32
  }
  func.func @transform_6(%arg0: i32) -> (i32, i32) {
    %c0_i32 = arith.constant 0 : i32
    %c0_i32_0 = arith.constant 0 : i32
    %c0_i32_1 = arith.constant 0 : i32
    return %c0_i32, %c0_i32_0 : i32, i32
  }
  func.func @transform_7(%arg0: i32) -> (i32, i32, i32) {
    %c0_i32 = arith.constant 0 : i32
    %c0_i32_0 = arith.constant 0 : i32
    %c0_i32_1 = arith.constant 0 : i32
    return %arg0, %c0_i32, %c0_i32_0 : i32, i32, i32
  }
}

</mosaic_0001>

<bundles_post_ra>
// kernel: bottleneck_forward.1
= control target key start
LH: loop header
LB: loop body
LE: loop exit
PB: predicated region body
PF: predicated region fallthrough
CT: control target
= control target key end

     0   :  { %12 = vsyncpa [#allocation4], 0  ;;  %s5113_s0 = inlined_call_operand.hbm [shape: f32[2,256,64], index: 0, kind: input, shape index: {}]   ;;  %s5114_s1 = inlined_call_operand.vmem [shape: bf16[64,32], index: 1, kind: input, shape index: {}]   ;;  %s5115_s2 = inlined_call_operand.vmem [shape: f32[1,32], index: 2, kind: input, shape index: {}]   ;;  %s5116_s3 = inlined_call_operand.vmem [shape: bf16[288,32], index: 3, kind: input, shape index: {}]   ;;  %s5117_s4 = inlined_call_operand.vmem [shape: f32[1,32], index: 4, kind: input, shape index: {}]   ;;  %s5118_s5 = inlined_call_operand.vmem [shape: bf16[32,64], index: 5, kind: input, shape index: {}]   ;;  %s5119_s6 = inlined_call_operand.vmem [shape: f32[1,64], index: 6, kind: input, shape index: {}]   ;;  %s5120_s7 = inlined_call_operand.hbm [shape: f32[2,256,64], index: 7, kind: output, shape index: {}]  }
   0x1   :  { %14 = vsyncpa [#allocation4 + $0x1], 0 }
   0x2   :  { %15 = vsyncpa [#allocation5], 0 }
   0x3   :  { %17 = vsyncpa [#allocation5 + $0x1], 0  ;;  %s3361_s24 = smov 0   ;;  %s3363_s25 = smov 0  }
   0x4   :  { %s3365_s26 = smov 0   ;;  %s3367_s27 = smov 0  }
   0x5 LB: > { %s3382_s28 = sadd.s32 4294967295, %s3309_s27   ;;  %s2756_s29 = sadd.s32 4294967294, %s3309_s27   ;;  %s3309_s27 = sphi %s3367_s27, %s5396_s27   ;;  %s3305_s26 = sphi %s3365_s26, %s5395_s26   ;;  %s3301_s25 = sphi %s3363_s25, %s5394_s25   ;;  %s3297_s24 = sphi %s3361_s24, %s5393_s24  }
   0x6   : > { %s3386_s30 = sadd.s32 1, %s3309_s27   ;;  %s30_s8 = sadd.s32 1, %s3305_s26 }
   0x7   : > { %s27_s9 = ssub.s32 %s3309_s27, %s3386_s30  ;;  %p37_p0 = scmp.ne.s32.totalorder %s3305_s26, %s3301_s25 }
   0x8   : > { %p28_p1 = scmp.eq.s32.totalorder %s27_s9, 0  ;;  %p38_p2 = scmp.eq.s32.totalorder %s3309_s27, 0 }
   0x9   : > { %p43_p3 = scmp.ne.s32.totalorder %s3301_s25, %s3297_s24  ;;  %p44_p4 = scmp.eq.s32.totalorder %s3382_s28, 0 }
   0xa   : > { %s3398_s10 = scalar_select %p28_p1, %s3305_s26, %s30_s8  }
   0xb   : > { %p3400_p5 = por %p38_p2, %p37_p0  ;;  %p3404_p6 = por %p44_p4, %p43_p3 }
   0xc   : > { %p193_p7 = scmp.eq.s32.totalorder %s3382_s28, 1  ;;  %p199_p8 = scmp.eq.s32.totalorder %s2756_s29, 1 }
   0xd   : > { %p3147_p10 = scmp.lt.s32.totalorder %s3309_s27, 2  ;;  %s237_s15 = sand.u32 1, %s3305_s26  }
   0xe   : > { %p3411_p11 = por %p193_p7, %p37_p0  ;;  %p3415_p12 = por %p199_p8, %p43_p3 }
   0xf   : > { %s2845_s16 = sshll.u32 %s3309_s27, 12  ;;  %s2759_s17 = sshll.u32 %s237_s15, 8 }
  0x10   : > { %s5144_s13 = scalar_select %p3411_p11, 1, 0 }
  0x11   : > { %s5145_s14 = scalar_select %p3415_p12, 1, 0 }
  0x12   : > { %s3424_s20 = scalar_lea.hbm %s5113_s0, %s2845_s16  ;;  %s241_s21 = scalar_lea.vmem [#allocation3], %s2759_s17 }
  0x13   : > { %s248_s22 = sshll.u32 %s241_s21, 4  ;;  %p3428_p13 = pnand %p3147_p10, %p3400_p5  ;;  %s3432_s22 = int_to_ptr.vmem [resolvable:$true] %s248_s22 }
  0x14   : > { %s3434_s29 = scalar_lea.sflag [#allocation4], %s237_s15  ;;  %s3213_s8 = scalar_lea.hbm %s3424_s20, 4096 }
  0x15   : > { %p3214_p0 = scmp.ne.s32.totalorder %s3424_s20, %s3213_s8  ;;  %p3215_p1 = pneg %p3428_p13 }
  0x16   : > { %s3218_s16 = scalar_lea.hbm %s5113_s0, 8192  ;;  %p3219_p4 = scmp.lt.u32.totalorder %s3424_s20, %s5113_s0 }
  0x17   : > { %p3216_p2 = pnand %p3215_p1, %p3214_p0  ;;  %p3220_p5 = scmp.lt.u32.totalorder %s3218_s16, %s3213_s8 }
  0x18   : > { %p3222_p8 = scmp.lt.u32.totalorder %s3213_s8, %s3424_s20 }
  0x19   : > { %p3217_p3 = pneg %p3216_p2  ;;  %p3221_p7 = por %p3220_p5, %p3219_p4 }
  0x1b   : > { %p3223_p10 = por %p3222_p8, %p3221_p7 }
  0x1d   : > { %p3224_p9 = pnand %p3223_p10, %p3217_p3 }
  0x1f   : > { %3227 = shalt.err (!%p3224_p9)
}
  0x20   : > { %s3228_s15 = scalar_lea.vmem %s3432_s22, 4096  ;;  %s3311_s19 = smov [#allocation3]  }
  0x21   : > { %p3229_p0 = scmp.ne.s32.totalorder %s3432_s22, %s3228_s15  ;;  %s3233_s21 = sshll.u32 %s3311_s19, 4  ;;  %s3234_s21 = int_to_ptr.vmem [resolvable:$false] %s3233_s21 }
  0x22   : > { %s3235_s9 = scalar_lea.vmem %s3234_s21, 8192  ;;  %p3236_p11 = scmp.lt.s32.totalorder %s3432_s22, %s3234_s21 }
  0x23   : > { %p3231_p2 = pnand %p3229_p0, %p3215_p1  ;;  %p3237_p4 = scmp.lt.s32.totalorder %s3235_s9, %s3228_s15 }
  0x25   : > { %p3232_p12 = pneg %p3231_p2  ;;  %p3238_p5 = por %p3237_p4, %p3236_p11 }
  0x27   : > { %p3239_p7 = pnand %p3238_p5, %p3232_p12 }
  0x29   : > { %3242 = shalt.err (!%p3239_p7)
}
  0x2a   : > { %s3312_s8 = smov 128   ;;  %s3313_s11 = smov 8  }
  0x2b   : > { %3142 = dma.hbm_to_vmem [thread:$0]  (!%p3428_p13), %s3424_s20, 4096, %s3432_s22, %s3434_s29, %s3312_s8, %s3312_s8, %s3313_s11  }
  0x2c   : > { %p2762_p9 = scmp.ge.s32.totalorder %s3309_s27, 1  ;;  %p256_p1 = scmp.lt.s32.totalorder %s3309_s27, 3 }
  0x2e   : > { %p257_p3 = pnand %p2762_p9, %p256_p1 }
  0x30   : > { %260 = sbr.rel (%p257_p3) target bundleno = 1072 (0x430), region = 48 }
  0x37   : > { %s3465_s16 = sand.u32 1, %s3301_s25  }
  0x38   : > { %s2763_s17 = sshll.u32 %s3465_s16, 8  ;;  %s263_s18 = scalar_lea.sflag [#allocation4], %s3465_s16 }
  0x39   : > { %s3471_s15 = scalar_lea.vmem [#allocation3], %s2763_s17 }
  0x3a   : > { %3288 = dma.done.wait (%p3404_p6), %s263_s18, 4096  }
  0x3b   : > { %3290 = vsyncadd (%p3404_p6), %s263_s18, 4294963200  ;;  %v3189_v0 = vld [vmem:[%s5114_s1] sm:$0xff]   ;;  %v3190_v1 = vld [vmem:[%s5114_s1 + $0x8] sm:$0xff]   ;;  %vm5130_vm0 = vcmask 523264   ;;  %vm5131_vm1 = vcmask 261120   ;;  %v3314_v52 = vmov 0.0   ;;  %v666_v58 = vlaneseq }
  0x3c   : > { %3015 = vmatprep.subr.bf16.mxu0 %v3189_v0  ;;  %3127 = vmatprep.subr.bf16.mxu1 %v3189_v0  ;;  %v3191_v2 = vld [vmem:[%s5114_s1 + $0x10] sm:$0xff]   ;;  %v299_v4 = vld [vmem:[%s3471_s15 + $0x8] sm:$0xff]  ;;  %v300_v10 = vld [vmem:[%s3471_s15 + $0x10] sm:$0xff]  ;;  %629 = vst.msk [vmem:[#allocation2 + $0x8] sm:$0xff] %vm5131_vm1, %v3314_v52  ;;  %s3315_s8 = smov 32   ;;  %s3316_s23 = smov 96  }
  0x3d   : > { %3016 = vmatpush3.bf16.msra.mxu0 %v3189_v0  ;;  %3131 = vmatpush3.bf16.msra.mxu1 %v3189_v0  ;;  %v298_v3 = vld [vmem:[%s3471_s15] sm:$0xff]  ;;  %v315_v7 = vld [vmem:[%s3471_s15 + $0x88] sm:$0xff]  ;;  %v301_v11 = vld [vmem:[%s3471_s15 + $0x18] sm:$0xff]  ;;  %630 = vst.msk [vmem:[#allocation2 + $0x10] sm:$0xff] %vm5131_vm1, %v3314_v52  ;;  %v3550_v59 = vshrl.u32 %v666_v58, 7  ;;  %s3317_s29 = smov 64  }
  0x3e   : > { %3017 = vmatprep.subr.bf16.mxu0 %v3190_v1  ;;  %3128 = vmatprep.subr.bf16.mxu1 %v3190_v1  ;;  %v314_v5 = vld [vmem:[%s3471_s15 + $0x80] sm:$0xff]  ;;  %v330_v6 = vpack.c.bf16 %v299_v4, %v298_v3  ;;  %v3192_v9 = vld [vmem:[%s5114_s1 + $0x18] sm:$0xff]   ;;  %v316_v12 = vld [vmem:[%s3471_s15 + $0x90] sm:$0xff]  ;;  %v331_v18 = vpack.c.bf16 %v301_v11, %v300_v10  ;;  %628 = vst.msk [vmem:[#allocation2] sm:$0xff] %vm5131_vm1, %v3314_v52  ;;  %s4940_s9 = scalar_lea.vmem [#allocation6], %s2763_s17  ;;  %s2846_s17 = sshll.u32 %s3382_s28, 12 }
  0x3f   : > { %v338_v8 = vpack.c.bf16 %v315_v7, %v314_v5  ;;  %v317_v13 = vld [vmem:[%s3471_s15 + $0x98] sm:$0xff]  ;;  %v302_v14 = vld [vmem:[%s3471_s15 + $0x20] sm:$0xff]  ;;  %v303_v15 = vld [vmem:[%s3471_s15 + $0x28] sm:$0xff]  ;;  %631 = vst.msk [vmem:[#allocation2 + $0x118] sm:$0xff] %vm5131_vm1, %v3314_v52  ;;  %v668_v63 = vadd.s32 8, %v3550_v59  ;;  %s2683_s11 = sshll.u32 %s4940_s9, 4  ;;  %s5063_s11 = int_to_ptr.vmem [resolvable:$true] %s2683_s11 }
  0x40   : > { %3023 = vmatprep.mubr.msk.bf16.mxu0 %vm5130_vm0, %v330_v6  ;;  %v318_v16 = vld [vmem:[%s3471_s15 + $0xa0] sm:$0xff]  ;;  %v319_v17 = vld [vmem:[%s3471_s15 + $0xa8] sm:$0xff]  ;;  %v339_v19 = vpack.c.bf16 %v317_v13, %v316_v12  ;;  %v332_v20 = vpack.c.bf16 %v303_v15, %v302_v14  ;;  %v304_v22 = vld [vmem:[%s3471_s15 + $0x30] sm:$0xff]  ;;  %632 = vst.msk [vmem:[#allocation2 + $0x120] sm:$0xff] %vm5131_vm1, %v3314_v52  ;;  %s2670_s28 = scalar_lea.sflag [#allocation5], %s3465_s16  ;;  %p5390_p11 = scmp.ne.s32.totalorder %s5144_s13, 0 }
  0x41   : > { %3018 = vmatpush3.bf16.msra.mxu0 %v3190_v1  ;;  %3132 = vmatpush3.bf16.msra.mxu1 %v3190_v1  ;;  %v340_v21 = vpack.c.bf16 %v319_v17, %v318_v16  ;;  %v305_v23 = vld [vmem:[%s3471_s15 + $0x38] sm:$0xff]  ;;  %v320_v24 = vld [vmem:[%s3471_s15 + $0xb0] sm:$0xff]  ;;  %v306_v26 = vld [vmem:[%s3471_s15 + $0x40] sm:$0xff]  ;;  %633 = vst.msk [vmem:[#allocation2 + $0x128] sm:$0xff] %vm5131_vm1, %v3314_v52  ;;  %v700_v13 = vand.u32 15, %v668_v63 }
  0x42   : > { %3019 = vmatprep.subr.bf16.mxu0 %v3191_v2  ;;  %3129 = vmatprep.subr.bf16.mxu1 %v3191_v2  ;;  %v321_v25 = vld [vmem:[%s3471_s15 + $0xb8] sm:$0xff]  ;;  %v307_v27 = vld [vmem:[%s3471_s15 + $0x48] sm:$0xff]  ;;  %v322_v28 = vld [vmem:[%s3471_s15 + $0xc0] sm:$0xff]  ;;  %v333_v30 = vpack.c.bf16 %v305_v23, %v304_v22 }
  0x43   : > { %3039 = vmatprep.mubr.msk.bf16.mxu1 %vm5130_vm0, %v338_v8  ;;  %v323_v29 = vld [vmem:[%s3471_s15 + $0xc8] sm:$0xff]  ;;  %v341_v31 = vpack.c.bf16 %v321_v25, %v320_v24  ;;  %v334_v32 = vpack.c.bf16 %v307_v27, %v306_v26  ;;  %v308_v34 = vld [vmem:[%s3471_s15 + $0x50] sm:$0xff]  ;;  %v309_v35 = vld [vmem:[%s3471_s15 + $0x58] sm:$0xff]  ;;  %v669_v8 = vadd.s32 16, %v3550_v59  ;;  %vm3602_vm2 = vcmp.lt.s32.totalorder %v700_v13, 15 }
  0x44   : > { %v342_v33 = vpack.c.bf16 %v323_v29, %v322_v28  ;;  %v324_v36 = vld [vmem:[%s3471_s15 + $0xd0] sm:$0xff]  ;;  %v325_v37 = vld [vmem:[%s3471_s15 + $0xd8] sm:$0xff]  ;;  %v310_v38 = vld [vmem:[%s3471_s15 + $0x60] sm:$0xff]  ;;  %v335_v42 = vpack.c.bf16 %v309_v35, %v308_v34  ;;  %v3588_v29 = vadd.s32 24, %v3550_v59 }
  0x45   : > { %3020 = vmatpush3.bf16.msra.mxu0 %v3191_v2  ;;  %3133 = vmatpush3.bf16.msra.mxu1 %v3191_v2  ;;  %v311_v39 = vld [vmem:[%s3471_s15 + $0x68] sm:$0xff]  ;;  %v326_v40 = vld [vmem:[%s3471_s15 + $0xe0] sm:$0xff]  ;;  %v343_v43 = vpack.c.bf16 %v325_v37, %v324_v36  ;;  %v312_v46 = vld [vmem:[%s3471_s15 + $0x70] sm:$0xff]  ;;  %v701_v28 = vand.u32 15, %v669_v8  ;;  %v699_v37 = vand.u32 15, %v3550_v59 }
  0x46   : > { %3021 = vmatprep.subr.bf16.mxu0 %v3192_v9  ;;  %3130 = vmatprep.subr.bf16.mxu1 %v3192_v9  ;;  %v327_v41 = vld [vmem:[%s3471_s15 + $0xe8] sm:$0xff]  ;;  %v336_v44 = vpack.c.bf16 %v311_v39, %v310_v38  ;;  %v313_v47 = vld [vmem:[%s3471_s15 + $0x78] sm:$0xff]  ;;  %v328_v48 = vld [vmem:[%s3471_s15 + $0xf0] sm:$0xff] }
  0x47   : > { %v344_v45 = vpack.c.bf16 %v327_v41, %v326_v40  ;;  %v329_v49 = vld [vmem:[%s3471_s15 + $0xf8] sm:$0xff]  ;;  %v337_v50 = vpack.c.bf16 %v313_v47, %v312_v46  ;;  %v876_v54 = vld [vmem:[#allocation2 + $0x10] sm:$0xff]  ;;  %v3193_v56 = vld [vmem:[%s5116_s3 + $0x80] sm:$0xff]   ;;  %vm3612_vm3 = vcmp.gt.s32.totalorder %v701_v28, 0  ;;  %vm3649_vm4 = vcmp.gt.s32.totalorder %v699_v37, 0 }
  0x48   : > { %v345_v51 = vpack.c.bf16 %v329_v49, %v328_v48  ;;  %v875_v53 = vld [vmem:[#allocation2 + $0x8] sm:$0xff]  ;;  %v3195_v60 = vld [vmem:[%s5116_s3 + $0x40] sm:$0xff]   ;;  %v3199_v14 = vld [vmem:[%s5116_s3 + $0x50] sm:$0xff]  }
  0x49   : > { %3022 = vmatpush3.bf16.msra.mxu0 %v3192_v9  ;;  %3134 = vmatpush3.bf16.msra.mxu1 %v3192_v9  ;;  %v907_v55 = vpack.c.bf16 %v876_v54, %v875_v53  ;;  %v3194_v57 = vld [vmem:[%s5116_s3 + $0x88] sm:$0xff]   ;;  %v3196_v61 = vld [vmem:[%s5116_s3] sm:$0xff]   ;;  %v3200_v25 = vld [vmem:[%s5116_s3 + $0x10] sm:$0xff]  }
  0x4a   : > { %3055 = vmatprep.subr.bf16.mxu0 %v3193_v56  ;;  %2867 = vmatprep.subr.bf16.mxu1 %v3195_v60  ;;  %v3561_v62 = vld [vmem:[%s5115_s2] ss:$0 sm:$0xff]  ;;  %v3197_v0 = vld [vmem:[%s5116_s3 + $0x48] sm:$0xff]   ;;  %v3202_v38 = vld [vmem:[%s5116_s3 + $0x18] sm:$0xff]  }
  0x4b   : > { %1225 = vrot.lane.b32.xlu0 %v907_v55, %s3315_s8  ;;  %v3198_v1 = vld [vmem:[%s5116_s3 + $0x8] sm:$0xff]  }
  0x4c   : > { %3024 = vmatmul.mubr.msk.bf16.vlgmr.msra.gmra.mrb[0].mxu0 %vm5130_vm0, %v331_v18  ;;  %3040 = vmatmul.mubr.msk.bf16.vlgmr.msra.gmra.mrb[0].mxu1 %vm5130_vm0, %v339_v19 }
  0x4d   : > { %3027 = vmatprep.mubr.msk.bf16.mxu0 %vm5130_vm0, %v332_v20  ;;  %3043 = vmatprep.mubr.msk.bf16.mxu1 %vm5130_vm0, %v340_v21 }
  0x4e   : > { %3056 = vmatpush3.bf16.msra.mxu0 %v3193_v56  ;;  %2868 = vmatpush3.bf16.msra.mxu1 %v3196_v61 }
  0x4f   : > { %3057 = vmatprep.subr.bf16.mxu0 %v3194_v57  ;;  %2869 = vmatprep.subr.bf16.mxu1 %v3197_v0  ;;  %v923_v0 = vld [vmem:[#allocation2 + $0x9] sm:$0xff] }
  0x52   : > { %3058 = vmatpush3.bf16.msra.mxu0 %v3194_v57  ;;  %2870 = vmatpush3.bf16.msra.mxu1 %v3198_v1 }
  0x53   : > { %2871 = vmatprep.subr.bf16.mxu1 %v3199_v14 }
  0x54   : > { %3028 = vmatmul.mubr.msk.bf16.gmra.mrb[4].mxu0 %vm5130_vm0, %v333_v30  ;;  %3044 = vmatmul.mubr.msk.bf16.gmra.mrb[4].mxu1 %vm5130_vm0, %v341_v31 }
  0x55   : > { %3031 = vmatprep.mubr.msk.bf16.mxu0 %vm5130_vm0, %v334_v32  ;;  %3047 = vmatprep.mubr.msk.bf16.mxu1 %vm5130_vm0, %v342_v33  ;;  %v3593_v32 = vadd.s32 136, %v3550_v59  ;;  %v3201_v33 = vld [vmem:[%s5116_s3 + $0x58] sm:$0xff]  }
  0x56   : > { %2872 = vmatpush3.bf16.msra.mxu1 %v3200_v25 }
  0x57   : > { %2873 = vmatprep.subr.bf16.mxu1 %v3201_v33  ;;  %v716_v49 = vand.u32 15, %v3593_v32 }
  0x59   : > { %vm3672_vm6 = vcmp.lt.s32.totalorder %v716_v49, 15 }
  0x5a   : > { %2874 = vmatpush3.bf16.msra.mxu1 %v3202_v38  ;;  %v3680_v38 = vadd.s32 56, %v3550_v59 }
  0x5c   : > { %3032 = vmatmul.mubr.msk.bf16.gmra.mrb[8].mxu0 %vm5130_vm0, %v335_v42  ;;  %3048 = vmatmul.mubr.msk.bf16.gmra.mrb[8].mxu1 %vm5130_vm0, %v343_v43  ;;  %v706_v36 = vand.u32 15, %v3680_v38 }
  0x5d   : > { %3035 = vmatprep.mubr.msk.bf16.mxu0 %vm5130_vm0, %v336_v44  ;;  %3051 = vmatprep.mubr.msk.bf16.mxu1 %vm5130_vm0, %v344_v45  ;;  %v702_v44 = vand.u32 15, %v3588_v29 }
  0x5e   : > { %vm3791_vm9 = vcmp.lt.s32.totalorder %v706_v36, 15 }
  0x5f   : > { %vm3656_vm5 = vcmp.lt.s32.totalorder %v702_v44, 15 }
  0x64   : > { %3036 = vmatmul.mubr.msk.bf16.gmra.mrb[12].mxu0 %vm5130_vm0, %v337_v50  ;;  %3052 = vmatmul.mubr.msk.bf16.gmra.mrb[12].mxu1 %vm5130_vm0, %v345_v51  ;;  %v3621_v50 = vadd.s32 128, %v3550_v59  ;;  %v3203_v51 = vld [vmem:[%s5116_s3 + $0x60] sm:$0xff]  }
  0x65   : > { %2875 = vmatprep.subr.bf16.mxu1 %v3203_v51 }
 0x11f   : > { %v3025_v2 = vpop.f32.mrb[0].mxu0  ;;  %v3041_v3 = vpop.f32.mrb[0].mxu1 }
 0x120   : > { %v477_v4 = vadd.f32 %v3025_v2, %v3561_v62  ;;  %v468_v5 = vpop.f32.mrb[1].mxu0  ;;  %v541_v6 = vadd.f32 %v3041_v3, %v3561_v62  ;;  %v532_v7 = vpop.f32.mrb[1].mxu1 }
 0x121   : > { %v469_v9 = vadd.f32 %v3561_v62, %v468_v5  ;;  %v3026_v10 = vpop.f32.mrb[2].mxu0  ;;  %v533_v11 = vadd.f32 %v3561_v62, %v532_v7  ;;  %v3042_v12 = vpop.f32.mrb[2].mxu1 }
 0x122   : > { %v597_v15 = vmax.f32 %v477_v4, 0.0  ;;  %v480_v16 = vadd.f32 %v3026_v10, %v3561_v62  ;;  %v471_v17 = vpop.f32.mrb[3].mxu0  ;;  %v613_v18 = vmax.f32 %v541_v6, 0.0  ;;  %v544_v19 = vadd.f32 %v3042_v12, %v3561_v62  ;;  %v535_v20 = vpop.f32.mrb[3].mxu1 }
 0x123   : > { %v595_v21 = vmax.f32 %v469_v9, 0.0  ;;  %v472_v22 = vadd.f32 %v3561_v62, %v471_v17  ;;  %v611_v23 = vmax.f32 %v533_v11, 0.0  ;;  %v536_v24 = vadd.f32 %v3561_v62, %v535_v20 }
 0x124   : > { %636 = vst.msk [vmem:[#allocation2 + $0x28] sm:$0xff] %vm5131_vm1, %v597_v15  ;;  %v598_v26 = vmax.f32 %v480_v16, 0.0  ;;  %652 = vst.msk [vmem:[#allocation2 + $0xa8] sm:$0xff] %vm5131_vm1, %v613_v18  ;;  %v614_v27 = vmax.f32 %v544_v19, 0.0  ;;  %v3635_v6 = vadd.s32 40, %v3550_v59  ;;  %v5152_v17 = vmov 0 }
 0x125   : > { %634 = vst.msk [vmem:[#allocation2 + $0x18] sm:$0xff] %vm5131_vm1, %v595_v21  ;;  %v596_v30 = vmax.f32 %v472_v22, 0.0  ;;  %650 = vst.msk [vmem:[#allocation2 + $0x98] sm:$0xff] %vm5131_vm1, %v611_v23  ;;  %v612_v31 = vmax.f32 %v536_v24, 0.0  ;;  %v5153_v17 = vsel %vm3649_vm4, 4294967295, %v5152_v17 }
 0x126   : > { %637 = vst.msk [vmem:[#allocation2 + $0x30] sm:$0xff] %vm5131_vm1, %v598_v26  ;;  %653 = vst.msk [vmem:[#allocation2 + $0xb0] sm:$0xff] %vm5131_vm1, %v614_v27  ;;  %v715_v26 = vand.u32 15, %v3621_v50 }
 0x127   : > { %635 = vst.msk [vmem:[#allocation2 + $0x20] sm:$0xff] %vm5131_vm1, %v596_v30  ;;  %651 = vst.msk [vmem:[#allocation2 + $0xa0] sm:$0xff] %vm5131_vm1, %v612_v31  ;;  %v3029_v34 = vpop.f32.mrb[4].mxu0  ;;  %v3045_v35 = vpop.f32.mrb[4].mxu1  ;;  %v704_v31 = vand.u32 15, %v3635_v6  ;;  %v680_v6 = vadd.s32 104, %v3550_v59 }
 0x128   : > { %v493_v39 = vadd.f32 %v3029_v34, %v3561_v62  ;;  %v557_v40 = vadd.f32 %v3045_v35, %v3561_v62  ;;  %v484_v41 = vpop.f32.mrb[5].mxu0  ;;  %v548_v42 = vpop.f32.mrb[5].mxu1  ;;  %5154 = vst [vmem:[#allocation10_spill] sm:$0xff] %v5153_v17  ;;  %vm3703_vm7 = vcmp.gt.s32.totalorder %v715_v26, 0 }
 0x129   : > { %v485_v45 = vadd.f32 %v3561_v62, %v484_v41  ;;  %v549_v46 = vadd.f32 %v3561_v62, %v548_v42  ;;  %v3030_v47 = vpop.f32.mrb[6].mxu0  ;;  %v3046_v48 = vpop.f32.mrb[6].mxu1  ;;  %vm3761_vm8 = vcmp.lt.s32.totalorder %v704_v31, 15 }
 0x12a   : > { %v601_v52 = vmax.f32 %v493_v39, 0.0  ;;  %v617_v53 = vmax.f32 %v557_v40, 0.0  ;;  %v496_v54 = vadd.f32 %v3030_v47, %v3561_v62  ;;  %v560_v55 = vadd.f32 %v3046_v48, %v3561_v62  ;;  %v487_v56 = vpop.f32.mrb[7].mxu0  ;;  %v551_v57 = vpop.f32.mrb[7].mxu1  ;;  %v3204_v40 = vld [vmem:[%s5116_s3 + $0x20] sm:$0xff]   ;;  %v3205_v48 = vld [vmem:[%s5116_s3 + $0x68] sm:$0xff]  }
 0x12b   : > { %v599_v58 = vmax.f32 %v485_v45, 0.0  ;;  %v615_v60 = vmax.f32 %v549_v46, 0.0  ;;  %v488_v61 = vadd.f32 %v3561_v62, %v487_v56  ;;  %v552_v63 = vadd.f32 %v3561_v62, %v551_v57  ;;  %v879_v3 = vld [vmem:[#allocation2 + $0x28] sm:$0xff]  ;;  %2876 = vmatpush3.bf16.msra.mxu1 %v3204_v40 }
 0x12c   : > { %640 = vst.msk [vmem:[#allocation2 + $0x48] sm:$0xff] %vm5131_vm1, %v601_v52  ;;  %656 = vst.msk [vmem:[#allocation2 + $0xc8] sm:$0xff] %vm5131_vm1, %v617_v53  ;;  %v602_v1 = vmax.f32 %v496_v54, 0.0  ;;  %v618_v2 = vmax.f32 %v560_v55, 0.0  ;;  %v924_v4 = vld [vmem:[#allocation2 + $0x11] sm:$0xff]  ;;  %v895_v11 = vld [vmem:[#allocation2 + $0xa8] sm:$0xff]  ;;  %2877 = vmatprep.subr.bf16.mxu1 %v3205_v48  ;;  %v1226_v55 = vpop.permute.xlu0 %1225 }
 0x12d   : > { %v3632_v5 = vld [vmem:[#allocation2 + $0x17] sm:$0xff]  ;;  %638 = vst.msk [vmem:[#allocation2 + $0x38] sm:$0xff] %vm5131_vm1, %v599_v58  ;;  %654 = vst.msk [vmem:[#allocation2 + $0xb8] sm:$0xff] %vm5131_vm1, %v615_v60  ;;  %v600_v7 = vmax.f32 %v488_v61, 0.0  ;;  %v616_v8 = vmax.f32 %v552_v63, 0.0  ;;  %v956_v10 = vsel %vm3602_vm2, %v924_v4, 0.0 }
 0x12e   : > { %v880_v9 = vld [vmem:[#allocation2 + $0x30] sm:$0xff]  ;;  %641 = vst.msk [vmem:[#allocation2 + $0x50] sm:$0xff] %vm5131_vm1, %v602_v1  ;;  %657 = vst.msk [vmem:[#allocation2 + $0xd0] sm:$0xff] %vm5131_vm1, %v618_v2  ;;  %v987_v14 = vpack.c.bf16 %v956_v10, %v923_v0  ;;  %v3645_v15 = vld [vmem:[#allocation2 + $0x1f] sm:$0xff]  ;;  %v829_v18 = vsel %vm3612_vm3, %v3632_v5, 0.0  ;;  %v1005_v51 = vsel %vm3649_vm4, %v3632_v5, 0.0 }
 0x12f   : > { %v896_v12 = vld [vmem:[#allocation2 + $0xb0] sm:$0xff]  ;;  %v3643_v13 = vpack.c.bf16 %v880_v9, %v879_v3  ;;  %639 = vst.msk [vmem:[#allocation2 + $0x40] sm:$0xff] %vm5131_vm1, %v600_v7  ;;  %655 = vst.msk [vmem:[#allocation2 + $0xc0] sm:$0xff] %vm5131_vm1, %v616_v8  ;;  %v3033_v16 = vpop.f32.mrb[8].mxu0  ;;  %v3049_v20 = vpop.f32.mrb[8].mxu1  ;;  %v3667_v24 = vpack.c.bf16 %v3645_v15, %v829_v18  ;;  %v893_v44 = vld [vmem:[#allocation2 + $0x98] sm:$0xff]  ;;  %v1037_v7 = vpack.c.bf16 %v3645_v15, %v1005_v51 }
 0x130   : > { %v509_v21 = vadd.f32 %v3033_v16, %v3561_v62  ;;  %v500_v22 = vpop.f32.mrb[9].mxu0  ;;  %1273 = vrot.lane.b32.xlu1 %v987_v14, %s3317_s29  ;;  %v3664_v23 = vpack.c.bf16 %v896_v12, %v895_v11  ;;  %v564_v25 = vpop.f32.mrb[9].mxu1  ;;  %v573_v29 = vadd.f32 %v3049_v20, %v3561_v62  ;;  %v894_v45 = vld [vmem:[#allocation2 + $0xa0] sm:$0xff]  ;;  %v3711_v58 = vld [vmem:[#allocation2 + $0x29] sm:$0xff]  ;;  %v3715_v61 = vadd.s32 152, %v3550_v59 }
 0x131   : > { %5151 = vst [vmem:[#allocation9_spill] sm:$0xff] %v3643_v13  ;;  %1451 = vrot.lane.b32.xlu0 %v3643_v13, %s3316_s23  ;;  %5158 = vst [vmem:[#allocation12_spill] sm:$0xff] %v3667_v24  ;;  %v501_v27 = vadd.f32 %v3561_v62, %v500_v22  ;;  %v3034_v28 = vpop.f32.mrb[10].mxu0  ;;  %v3050_v32 = vpop.f32.mrb[10].mxu1  ;;  %v565_v37 = vadd.f32 %v3561_v62, %v564_v25  ;;  %v3700_v52 = vld [vmem:[#allocation2 + $0x21] sm:$0xff]  ;;  %v3718_v63 = vpack.c.bf16 %v894_v45, %v893_v44  ;;  %v3734_v9 = vld [vmem:[#allocation2 + $0x19] sm:$0xff] }
 0x132   : > { %5157 = vst [vmem:[#allocation11_spill] sm:$0xff] %v3664_v23  ;;  %v605_v33 = vmax.f32 %v509_v21, 0.0  ;;  %v512_v34 = vadd.f32 %v3034_v28, %v3561_v62  ;;  %v503_v35 = vpop.f32.mrb[11].mxu0  ;;  %v567_v39 = vpop.f32.mrb[11].mxu1  ;;  %v621_v46 = vmax.f32 %v573_v29, 0.0  ;;  %v576_v47 = vadd.f32 %v3050_v32, %v3561_v62  ;;  %v878_v16 = vld [vmem:[#allocation2 + $0x20] sm:$0xff] }
 0x133   : > { %v603_v41 = vmax.f32 %v501_v27, 0.0  ;;  %v504_v42 = vadd.f32 %v3561_v62, %v503_v35  ;;  %v619_v53 = vmax.f32 %v565_v37, 0.0  ;;  %v568_v54 = vadd.f32 %v3561_v62, %v567_v39  ;;  %5163 = vst [vmem:[#allocation13_spill] sm:$0xff] %v3718_v63  ;;  %v3748_v18 = vld [vmem:[#allocation2 + $0xa1] sm:$0xff]  ;;  %v877_v37 = vld [vmem:[#allocation2 + $0x18] sm:$0xff] }
 0x134   : > { %644 = vst.msk [vmem:[#allocation2 + $0x68] sm:$0xff] %vm5131_vm1, %v605_v33  ;;  %v3691_v49 = vld [vmem:[#allocation2 + $0x31] sm:$0xff]  ;;  %v606_v50 = vmax.f32 %v512_v34, 0.0  ;;  %1229 = vrot.lane.b32.xlu1 %v3643_v13, %s3315_s8  ;;  %660 = vst.msk [vmem:[#allocation2 + $0xe8] sm:$0xff] %vm5131_vm1, %v621_v46  ;;  %v622_v60 = vmax.f32 %v576_v47, 0.0  ;;  %v3727_v4 = vadd.s32 32, %v3550_v59  ;;  %v3776_v40 = vpack.c.bf16 %v878_v16, %v877_v37 }
 0x135   : > { %1467 = vrot.lane.b32.xlu0 %v3664_v23, %s3316_s23  ;;  %642 = vst.msk [vmem:[#allocation2 + $0x58] sm:$0xff] %vm5131_vm1, %v603_v41  ;;  %v1162_v56 = vsel %vm3602_vm2, %v3691_v49, 0.0  ;;  %v604_v57 = vmax.f32 %v504_v42, 0.0  ;;  %658 = vst.msk [vmem:[#allocation2 + $0xd8] sm:$0xff] %vm5131_vm1, %v619_v53  ;;  %v620_v3 = vmax.f32 %v568_v54, 0.0  ;;  %v1059_v10 = vsel %vm3602_vm2, %v3700_v52, 0.0 }
 0x136   : > { %645 = vst.msk [vmem:[#allocation2 + $0x70] sm:$0xff] %vm5131_vm1, %v606_v50  ;;  %v1193_v0 = vpack.c.bf16 %v1162_v56, %v3711_v58  ;;  %v3721_v1 = vld [vmem:[#allocation2 + $0x39] sm:$0xff]  ;;  %v3723_v2 = vld [vmem:[#allocation2 + $0x41] sm:$0xff]  ;;  %661 = vst.msk [vmem:[#allocation2 + $0xf0] sm:$0xff] %vm5131_vm1, %v622_v60  ;;  %v3741_v11 = vadd.s32 120, %v3550_v59  ;;  %v3753_v20 = vadd.s32 144, %v3550_v59  ;;  %v1090_v35 = vpack.c.bf16 %v1059_v10, %v3734_v9 }
 0x137   : > { %643 = vst.msk [vmem:[#allocation2 + $0x60] sm:$0xff] %vm5131_vm1, %v604_v57  ;;  %v3037_v5 = vpop.f32.mrb[12].mxu0  ;;  %v1164_v8 = vsel %vm3656_vm5, %v3723_v2, 0.0  ;;  %659 = vst.msk [vmem:[#allocation2 + $0xe0] sm:$0xff] %vm5131_vm1, %v620_v3  ;;  %v3755_v21 = vpop.f32.mrb[12].mxu1  ;;  %v676_v27 = vadd.s32 72, %v3550_v59 }
 0x138   : > { %v525_v12 = vadd.f32 %v3037_v5, %v3561_v62  ;;  %v516_v14 = vpop.f32.mrb[13].mxu0  ;;  %3059 = vmatprep.mubr.msk.bf16.mxu0 %vm5131_vm1, %v1193_v0  ;;  %v1194_v15 = vpack.c.bf16 %v1164_v8, %v3721_v1  ;;  %1321 = vrot.lane.b32.xlu1 %v1037_v7, %s3316_s23  ;;  %v718_v28 = vand.u32 15, %v3715_v61  ;;  %v3767_v29 = vpop.f32.mrb[13].mxu1  ;;  %5166 = vst [vmem:[#allocation14_spill] sm:$0xff] %v3776_v40  ;;  %v3778_v41 = vld [vmem:[#allocation2 + $0x99] sm:$0xff]  ;;  %v1075_v42 = vsel %vm3672_vm6, %v3748_v18, 0.0 }
 0x139   : > { %1465 = vrot.lane.b32.xlu0 %v3718_v63, %s3316_s23  ;;  %v517_v22 = vadd.f32 %v3561_v62, %v516_v14  ;;  %v3038_v25 = vpop.f32.mrb[14].mxu0  ;;  %v3773_v31 = vpop.f32.mrb[14].mxu1  ;;  %v3783_v44 = vld [vmem:[#allocation2 + $0x49] sm:$0xff]  ;;  %v678_v51 = vadd.s32 88, %v3550_v59  ;;  %v714_v53 = vand.u32 15, %v3741_v11  ;;  %v3808_v60 = vadd.s32 168, %v3550_v59 }
 0x13a   : > { %v609_v32 = vmax.f32 %v525_v12, 0.0  ;;  %v528_v33 = vadd.f32 %v3038_v25, %v3561_v62  ;;  %v519_v34 = vpop.f32.mrb[15].mxu0  ;;  %3060 = vmatmul.mubr.msk.bf16.vlgmr.msra.gmra.mrb[16].mxu0 %vm5131_vm1, %v1194_v15  ;;  %v3785_v45 = vpop.f32.mrb[15].mxu1  ;;  %v3795_v50 = vld [vmem:[#allocation2 + $0xa7] sm:$0xff]  ;;  %v3811_v61 = vadd.s32 48, %v3550_v59  ;;  %v1098_v0 = vpack.c.bf16 %v1075_v42, %v3778_v41  ;;  %v3824_v12 = vld [vmem:[#allocation2 + $0xaf] sm:$0xff] }
 0x13b   : > { %v607_v38 = vmax.f32 %v517_v22, 0.0  ;;  %v520_v39 = vadd.f32 %v3561_v62, %v519_v34  ;;  %v3805_v57 = vld [vmem:[#allocation2 + $0x27] sm:$0xff]  ;;  %v708_v8 = vand.u32 15, %v676_v27  ;;  %v712_v10 = vand.u32 15, %v680_v6  ;;  %v3207_v34 = vld [vmem:[%s5116_s3 + $0x70] sm:$0xff]  }
 0x13c   : > { %648 = vst.msk [vmem:[#allocation2 + $0x88] sm:$0xff] %vm5131_vm1, %v609_v32  ;;  %v610_v46 = vmax.f32 %v528_v33, 0.0  ;;  %v3789_v47 = vld [vmem:[#allocation2 + $0x51] sm:$0xff]  ;;  %1227 = vrot.lane.b32.xlu1 %v3776_v40, %s3315_s8  ;;  %v1124_v14 = vsel %vm3703_vm7, %v3795_v50, 0.0  ;;  %v717_v15 = vand.u32 15, %v3753_v20  ;;  %v703_v16 = vand.u32 15, %v3727_v4 }
 0x13d   : > { %1369 = vrot.lane.b32.xlu0 %v1090_v35, %s3315_s8  ;;  %646 = vst.msk [vmem:[#allocation2 + $0x78] sm:$0xff] %vm5131_vm1, %v607_v38  ;;  %v608_v54 = vmax.f32 %v520_v39, 0.0  ;;  %v1166_v56 = vsel %vm3761_vm8, %v3789_v47, 0.0  ;;  %v1108_v22 = vsel %vm3649_vm4, %v3805_v57, 0.0  ;;  %v710_v25 = vand.u32 15, %v678_v51  ;;  %v3206_v20 = vld [vmem:[%s5116_s3 + $0x28] sm:$0xff]  }
 0x13e   : > { %649 = vst.msk [vmem:[#allocation2 + $0x90] sm:$0xff] %vm5131_vm1, %v610_v46  ;;  %v1195_v3 = vpack.c.bf16 %v1166_v56, %v3783_v44  ;;  %v3816_v5 = vld [vmem:[#allocation2 + $0x59] sm:$0xff]  ;;  %v3818_v7 = vld [vmem:[#allocation2 + $0x61] sm:$0xff]  ;;  %vm3837_vm10 = vcmp.lt.s32.totalorder %v718_v28, 15  ;;  %vm3846_vm11 = vcmp.lt.s32.totalorder %v714_v53, 15  ;;  %v720_v32 = vand.u32 15, %v3808_v60  ;;  %2878 = vmatpush3.bf16.msra.mxu1 %v3206_v20 }
 0x13f   : > { %647 = vst.msk [vmem:[#allocation2 + $0x80] sm:$0xff] %vm5131_vm1, %v608_v54  ;;  %v1168_v11 = vsel %vm3791_vm9, %v3818_v7, 0.0  ;;  %v3852_v33 = vadd.s32 64, %v3550_v59  ;;  %v3855_v28 = vadd.s32 112, %v3550_v59  ;;  %v1148_v35 = vpack.c.bf16 %v3824_v12, %v1124_v14  ;;  %v3862_v37 = vld [vmem:[#allocation2 + $0x2f] sm:$0xff]  ;;  %2879 = vmatprep.subr.bf16.mxu1 %v3207_v34  ;;  %v3956_v17 = vld [vmem:[#allocation2 + $0x37] sm:$0xff] }
 0x140   : > { %3063 = vmatprep.mubr.msk.bf16.mxu0 %vm5131_vm1, %v1195_v3  ;;  %v1196_v36 = vpack.c.bf16 %v1168_v11, %v3816_v5  ;;  %1243 = vrot.lane.b32.xlu1 %v3718_v63, %s3315_s8  ;;  %vm3864_vm12 = vcmp.lt.s32.totalorder %v708_v8, 15  ;;  %vm3868_vm13 = vcmp.lt.s32.totalorder %v712_v10, 15  ;;  %v5175_v38 = vmov 0  ;;  %v3208_v42 = vld [vmem:[%s5116_s3 + $0x30] sm:$0xff]   ;;  %v883_v40 = vld [vmem:[#allocation2 + $0x48] sm:$0xff] }
 0x141   : > { %1385 = vrot.lane.b32.xlu0 %v1098_v0, %s3315_s8  ;;  %v5176_v38 = vsel %vm3868_vm13, 4294967295, %v5175_v38  ;;  %v1140_v46 = vpack.c.bf16 %v3862_v37, %v1108_v22  ;;  %v1061_v51 = vsel %vm3656_vm5, %v3691_v49, 0.0  ;;  %v3880_v53 = vld [vmem:[#allocation2 + $0x69] sm:$0xff]  ;;  %vm3882_vm14 = vcmp.gt.s32.totalorder %v717_v15, 0  ;;  %v3209_v0 = vld [vmem:[%s5116_s3 + $0x78] sm:$0xff]   ;;  %v4006_v43 = vld [vmem:[#allocation2 + $0xc1] sm:$0xff] }
 0x142   : > { %3064 = vmatmul.mubr.msk.bf16.gmra.mrb[20].mxu0 %vm5131_vm1, %v1196_v36  ;;  %5177 = vst [vmem:[#allocation15_spill] sm:$0xff] %v3880_v53  ;;  %v3887_v56 = vadd.s32 80, %v3550_v59  ;;  %v3890_v60 = vadd.s32 160, %v3550_v59  ;;  %v958_v3 = vsel %vm3656_vm5, %v3700_v52, 0.0  ;;  %vm3901_vm15 = vcmp.lt.s32.totalorder %v710_v25, 15  ;;  %v3210_v25 = vld [vmem:[%s5116_s3 + $0x38] sm:$0xff]   ;;  %2880 = vmatpush3.bf16.msra.mxu1 %v3208_v42 }
 0x143   : > { %v5181_v10 = vmov 0  ;;  %v690_v11 = vadd.s32 184, %v3550_v59  ;;  %v3907_v14 = vadd.s32 176, %v3550_v59  ;;  %v3915_v52 = vadd.s32 96, %v3550_v59  ;;  %v884_v63 = vld [vmem:[#allocation2 + $0x50] sm:$0xff]  ;;  %2881 = vmatprep.subr.bf16.mxu1 %v3209_v0 }
 0x144   : > { %v3899_v8 = vld [vmem:[#allocation2 + $0x71] sm:$0xff]  ;;  %v5182_v10 = vsel %vm3901_vm15, 4294967295, %v5181_v10  ;;  %1417 = vrot.lane.b32.xlu1 %v1140_v46, %s3317_s29  ;;  %v1091_v20 = vpack.c.bf16 %v1061_v51, %v3711_v58  ;;  %vm3929_vm2 = vcmp.lt.s32.totalorder %v720_v32, 15  ;;  %vm3933_vm5 = vcmp.gt.s32.totalorder %v703_v16, 0  ;;  %v943_v23 = vld [vmem:[#allocation2 + $0xa9] sm:$0xff] }
 0x145   : > { %1433 = vrot.lane.b32.xlu0 %v1148_v35, %s3317_s29  ;;  %5180 = vst [vmem:[#allocation16_spill] sm:$0xff] %v3899_v8  ;;  %5183 = vst [vmem:[#allocation17_spill] sm:$0xff] %v5182_v10  ;;  %v1170_v15 = vsel %vm3864_vm12, %v3899_v8, 0.0  ;;  %v940_v36 = vld [vmem:[#allocation2 + $0x91] sm:$0xff]  ;;  %v939_v39 = vld [vmem:[#allocation2 + $0x89] sm:$0xff]  ;;  %v3938_v51 = vadd.s32 200, %v3550_v59 }
 0x146   : > { %v1197_v34 = vpack.c.bf16 %v1170_v15, %v3880_v53  ;;  %v3923_v35 = vld [vmem:[#allocation2 + $0x79] sm:$0xff]  ;;  %v3925_v46 = vld [vmem:[#allocation2 + $0x81] sm:$0xff]  ;;  %v1174_v19 = vsel %vm3868_vm13, %v940_v36, 0.0  ;;  %v988_v15 = vpack.c.bf16 %v958_v3, %v3734_v9  ;;  %v3944_v32 = vld [vmem:[#allocation2 + $0xb1] sm:$0xff]  ;;  %v719_v16 = vand.u32 15, %v3890_v60  ;;  %2882 = vmatpush3.bf16.msra.mxu1 %v3210_v25 }
 0x147   : > { %v1172_v13 = vsel %vm3901_vm15, %v3925_v46, 0.0  ;;  %v1007_v9 = vsel %vm3612_vm3, %v3805_v57, 0.0  ;;  %v722_v3 = vand.u32 15, %v690_v11  ;;  %v1199_v53 = vpack.c.bf16 %v1174_v19, %v939_v39  ;;  %v3987_v25 = vld [vmem:[#allocation2 + $0x3f] sm:$0xff] }
 0x148   : > { %3067 = vmatprep.mubr.msk.bf16.mxu0 %vm5131_vm1, %v1197_v34  ;;  %v1198_v42 = vpack.c.bf16 %v1172_v13, %v3923_v35  ;;  %1275 = vrot.lane.b32.xlu1 %v988_v15, %s3317_s29  ;;  %v3960_v0 = vadd.s32 192, %v3550_v59  ;;  %v3966_v13 = vpack.c.bf16 %v884_v63, %v883_v40  ;;  %v1077_v11 = vsel %vm3837_vm10, %v3944_v32, 0.0 }
 0x149   : > { %1371 = vrot.lane.b32.xlu0 %v1091_v20, %s3315_s8  ;;  %v3963_v20 = vadd.s32 208, %v3550_v59  ;;  %v974_v19 = vsel %vm3837_vm10, %v3748_v18, 0.0  ;;  %v1038_v15 = vpack.c.bf16 %v3862_v37, %v1007_v9  ;;  %v1176_v63 = vsel %vm3846_vm11, %v3748_v18, 0.0 }
 0x14a   : > { %3068 = vmatmul.mubr.msk.bf16.gmra.mrb[24].mxu0 %vm5131_vm1, %v1198_v42  ;;  %5188 = vst [vmem:[#allocation18_spill] sm:$0xff] %v3966_v13  ;;  %v1178_v40 = vsel %vm3672_vm6, %v3944_v32, 0.0  ;;  %v1073_v42 = vsel %vm3846_vm11, %v940_v36, 0.0  ;;  %v972_v18 = vsel %vm3672_vm6, %v940_v36, 0.0  ;;  %vm3996_vm0 = vcmp.gt.s32.totalorder %v719_v16, 0 }
 0x14b   : > { %3071 = vmatprep.mubr.msk.bf16.mxu0 %vm5131_vm1, %v1199_v53  ;;  %v1110_v53 = vsel %vm3612_vm3, %v3956_v17, 0.0  ;;  %v3992_v9 = vpack.c.bf16 %v1073_v42, %v939_v39  ;;  %vm4000_vm1 = vcmp.lt.s32.totalorder %v722_v3, 15  ;;  %v1099_v8 = vpack.c.bf16 %v1077_v11, %v943_v23  ;;  %v4014_v3 = vld [vmem:[#allocation2 + $0xb9] sm:$0xff] }
 0x14c   : > { %1323 = vrot.lane.b32.xlu1 %v1038_v15, %s3316_s23  ;;  %v996_v10 = vpack.c.bf16 %v974_v19, %v3778_v41  ;;  %v4008_v42 = vpack.c.bf16 %v972_v18, %v939_v39  ;;  %v1071_v30 = vsel %vm3868_vm13, %v3925_v46, 0.0  ;;  %v1200_v36 = vpack.c.bf16 %v1176_v63, %v3778_v41 }
 0x14d   : > { %1455 = vrot.lane.b32.xlu0 %v3966_v13, %s3316_s23  ;;  %5189 = vst [vmem:[#allocation19_spill] sm:$0xff] %v3992_v9  ;;  %v1201_v16 = vpack.c.bf16 %v1178_v40, %v943_v23  ;;  %v4017_v9 = vpack.c.bf16 %v1071_v30, %v3923_v35  ;;  %v1023_v11 = vsel %vm3882_vm14, %v3795_v50, 0.0  ;;  %v1141_v19 = vpack.c.bf16 %v3987_v25, %v1110_v53  ;;  %v882_v30 = vld [vmem:[#allocation2 + $0x40] sm:$0xff] }
 0x14e   : > { %v960_v39 = vsel %vm3761_vm8, %v3691_v49, 0.0  ;;  %v4027_v15 = vpack.c.bf16 %v3824_v12, %v1023_v11  ;;  %v589_v41 = vadd.f32 %v3755_v21, %v3561_v62  ;;  %v5196_v63 = vand.u32 15, %v3811_v61 }
 0x14f   : > { %5194 = vst [vmem:[#allocation20_spill] sm:$0xff] %v4017_v9  ;;  %v5199_v53 = vand.u32 15, %v3852_v33  ;;  %v581_v49 = vadd.f32 %v3561_v62, %v3767_v29  ;;  %v592_v21 = vadd.f32 %v3773_v31, %v3561_v62  ;;  %v1079_v61 = vsel %vm3929_vm2, %v4006_v43, 0.0  ;;  %v881_v33 = vld [vmem:[#allocation2 + $0x38] sm:$0xff] }
 0x150   : > { %5195 = vst [vmem:[#allocation21_spill] sm:$0xff] %v4027_v15  ;;  %vm4034_vm3 = vcmp.gt.s32.totalorder %v5196_v63, 0  ;;  %1291 = vrot.lane.b32.xlu1 %v996_v10, %s3317_s29  ;;  %v625_v11 = vmax.f32 %v589_v41, 0.0  ;;  %v4055_v63 = vpack.c.bf16 %v1079_v61, %v4014_v3  ;;  %v976_v29 = vsel %vm3929_vm2, %v3944_v32, 0.0  ;;  %v948_v31 = vld [vmem:[#allocation2 + $0xd1] sm:$0xff]  ;;  %v4070_v32 = vld [vmem:[#allocation2 + $0xbf] sm:$0xff] }
 0x151   : > { %1387 = vrot.lane.b32.xlu0 %v1099_v8, %s3315_s8  ;;  %vm4040_vm6 = vcmp.gt.s32.totalorder %v5199_v53, 0  ;;  %v584_v8 = vadd.f32 %v3561_v62, %v3785_v45  ;;  %v831_v62 = vsel %vm3933_vm5, %v3805_v57, 0.0  ;;  %vm5203_vm4 = vcmask 261120   ;;  %v4064_v45 = vld [vmem:[#allocation2 + $0xb7] sm:$0xff] }
 0x152   : > { %5202 = vst [vmem:[#allocation22_spill] sm:$0xff] %v4055_v63  ;;  %3072 = vmatmul.mubr.msk.bf16.gmra.mrb[28].mxu0 %vm5203_vm4, %v1200_v36  ;;  %v623_v10 = vmax.f32 %v581_v49, 0.0  ;;  %v626_v53 = vmax.f32 %v592_v21, 0.0  ;;  %v4066_v41 = vpack.c.bf16 %v976_v29, %v943_v23  ;;  %vm5204_vm13 = vmmov %vm5203_vm4  ;;  %v989_v61 = vpack.c.bf16 %v960_v39, %v3711_v58  ;;  %v947_v63 = vld [vmem:[#allocation2 + $0xc9] sm:$0xff]  ;;  %v4072_v9 = vld [vmem:[#allocation2 + $0x97] sm:$0xff] }
 0x153   : > { %v624_v15 = vmax.f32 %v584_v8, 0.0  ;;  %3075 = vmatprep.mubr.msk.bf16.mxu0 %vm5204_vm13, %v1201_v16  ;;  %vm5205_vm15 = vmmov %vm5203_vm4  ;;  %v4076_v57 = vpack.c.bf16 %v3862_v37, %v831_v62  ;;  %v970_v36 = vsel %vm3846_vm11, %v3925_v46, 0.0  ;;  %v723_v23 = vand.u32 15, %v3960_v0  ;;  %v4111_v49 = vld [vmem:[#allocation2 + $0x9f] sm:$0xff] }
 0x154   : > { %664 = vst.msk [vmem:[#allocation2 + $0x108] sm:$0xff] %vm5205_vm15, %v625_v11  ;;  %v4083_v16 = vpack.c.bf16 %v882_v30, %v881_v33  ;;  %v1180_v58 = vsel %vm3837_vm10, %v4006_v43, 0.0  ;;  %vm5208_vm13 = vmmov %vm5203_vm4  ;;  %v4092_v37 = vpack.c.bf16 %v970_v36, %v3923_v35  ;;  %v725_v4 = vand.u32 15, %v3963_v20  ;;  %1277 = vrot.lane.b32.xlu1 %v989_v61, %s3317_s29  ;;  %v4122_v30 = vld [vmem:[#allocation2 + $0xe1] sm:$0xff]  ;;  %v949_v61 = vld [vmem:[#allocation2 + $0xd9] sm:$0xff] }
 0x155   : > { %5206 = vst [vmem:[#allocation23_spill] sm:$0xff] %v4076_v57  ;;  %1419 = vrot.lane.b32.xlu0 %v1141_v19, %s3317_s29  ;;  %662 = vst.msk [vmem:[#allocation2 + $0xf8] sm:$0xff] %vm5203_vm4, %v623_v10  ;;  %v1182_v46 = vsel %vm3929_vm2, %v948_v31, 0.0  ;;  %v1126_v27 = vsel %vm3882_vm14, %v4064_v45, 0.0  ;;  %v1081_v19 = vsel %vm4000_vm1, %v948_v31, 0.0  ;;  %v1025_v39 = vsel %vm3996_vm0, %v4064_v45, 0.0 }
 0x156   : > { %5207 = vst [vmem:[#allocation24_spill] sm:$0xff] %v4083_v16  ;;  %665 = vst.msk [vmem:[#allocation2 + $0x110] sm:$0xff] %vm5208_vm13, %v626_v53  ;;  %v1009_v35 = vsel %vm3933_vm5, %v3956_v17, 0.0  ;;  %v4113_v24 = vpack.c.bf16 %v1081_v19, %v947_v63  ;;  %v4116_v21 = vpack.c.bf16 %v4070_v32, %v1025_v39  ;;  %v845_v8 = vsel %vm3882_vm14, %v4072_v9, 0.0  ;;  %v4256_v20 = vld [vmem:[#allocation2 + $0x6f] sm:$0xff] }
 0x157   : > { %vm5209_vm15 = vmmov %vm5203_vm4  ;;  %v1202_v33 = vpack.c.bf16 %v1180_v58, %v4014_v3  ;;  %v5210_v11 = vand.u32 15, %v3938_v51  ;;  %v4131_v62 = vpack.c.bf16 %v4111_v49, %v845_v8  ;;  %v978_v10 = vsel %vm4000_vm1, %v4006_v43, 0.0 }
 0x158   : > { %663 = vst.msk [vmem:[#allocation2 + $0x100] sm:$0xff] %vm5209_vm15, %v624_v15  ;;  %v4109_v15 = vld [vmem:[#allocation2 + $0x47] sm:$0xff]  ;;  %v1203_v54 = vpack.c.bf16 %v1182_v46, %v947_v63  ;;  %v1149_v53 = vpack.c.bf16 %v4070_v32, %v1126_v27  ;;  %v4140_v51 = vpack.c.bf16 %v978_v10, %v4014_v3  ;;  %1233 = vrot.lane.b32.xlu1 %v3966_v13, %s3315_s8  ;;  %v1063_v43 = vsel %vm3761_vm8, %v3723_v2, 0.0  ;;  %v4151_v46 = vld [vmem:[#allocation2 + $0x4f] sm:$0xff]  ;;  %vm5216_vm14 = vmmov %vm5203_vm4 }
 0x159   : > { %vm4126_vm10 = vcmp.lt.s32.totalorder %v5210_v11, 15  ;;  %1453 = vrot.lane.b32.xlu0 %v4083_v16, %s3316_s23  ;;  %v1039_v58 = vpack.c.bf16 %v3987_v25, %v1009_v35  ;;  %v1112_v3 = vsel %vm3933_vm5, %v4109_v15, 0.0  ;;  %v5213_v27 = vand.u32 15, %v3887_v56  ;;  %vm5217_vm8 = vmmov %vm5203_vm4  ;;  %v5263_v11 = vld [vmem:[#allocation10_spill] sm:$0xff] }
 0x15a   : > { %v1083_v36 = vsel %vm4126_vm10, %v4122_v30, 0.0  ;;  %3076 = vmatmul.mubr.msk.bf16.gmra.mrb[32].mxu0 %vm5216_vm14, %v1202_v33  ;;  %v962_v26 = vsel %vm3791_vm9, %v3723_v2, 0.0  ;;  %v980_v35 = vsel %vm4126_vm10, %v948_v31, 0.0  ;;  %v694_v22 = vadd.s32 216, %v3550_v59  ;;  %vm5242_vm14 = vmmov %vm5217_vm8 }
 0x15b   : > { %vm4158_vm11 = vcmp.gt.s32.totalorder %v5213_v27, 0  ;;  %v4162_v39 = vpack.c.bf16 %v1083_v36, %v949_v61  ;;  %v696_v8 = vadd.s32 232, %v3550_v59  ;;  %3079 = vmatprep.mubr.msk.bf16.mxu0 %vm5217_vm8, %v1203_v54  ;;  %v5218_v56 = vand.u32 15, %v3855_v28  ;;  %v951_v28 = vld [vmem:[#allocation2 + $0xe9] sm:$0xff] }
 0x15c   : > { %v1184_v33 = vsel %vm4000_vm1, %v4122_v30, 0.0  ;;  %v952_v2 = vld [vmem:[#allocation2 + $0xf1] sm:$0xff]  ;;  %v4182_v10 = vpack.c.bf16 %v980_v35, %v947_v63  ;;  %v835_v31 = vsel %vm4040_vm6, %v4109_v15, 0.0  ;;  %v833_v54 = vsel %vm4034_vm3, %v3956_v17, 0.0  ;;  %1325 = vrot.lane.b32.xlu1 %v1039_v58, %s3316_s23 }
 0x15d   : > { %vm4175_vm2 = vcmp.gt.s32.totalorder %v5218_v56, 0  ;;  %1435 = vrot.lane.b32.xlu0 %v1149_v53, %s3317_s29  ;;  %v1186_v36 = vsel %vm4126_vm10, %v952_v2, 0.0  ;;  %v726_v27 = vand.u32 15, %v694_v22  ;;  %v728_v34 = vand.u32 15, %v696_v8  ;;  %vm5240_vm10 = vmmov %vm5217_vm8 }
 0x15e   : > { %5221 = vst [vmem:[#allocation25_spill] sm:$0xff] %v4182_v10  ;;  %v4194_v56 = vpack.c.bf16 %v4151_v46, %v835_v31  ;;  %v1092_v63 = vpack.c.bf16 %v1063_v43, %v3721_v1  ;;  %v1065_v35 = vsel %vm3791_vm9, %v3789_v47, 0.0  ;;  %v5223_v17 = vand.u32 15, %v3915_v52 }
 0x15f   : > { %v4208_v29 = vpack.c.bf16 %v3987_v25, %v833_v54  ;;  %v1142_v22 = vpack.c.bf16 %v4151_v46, %v1112_v3  ;;  %v990_v8 = vpack.c.bf16 %v962_v26, %v3721_v1  ;;  %v1204_v58 = vpack.c.bf16 %v1184_v33, %v949_v61  ;;  %v4222_v52 = vld [vmem:[#allocation2 + $0x101] sm:$0xff] }
 0x160   : > { %5222 = vst [vmem:[#allocation26_spill] sm:$0xff] %v4194_v56  ;;  %vm4203_vm1 = vcmp.gt.s32.totalorder %v5223_v17, 0  ;;  %v5227_v43 = vand.u32 15, %v3907_v14  ;;  %vm4218_vm9 = vcmp.lt.s32.totalorder %v726_v27, 15  ;;  %v4224_v17 = vld [vmem:[#allocation2 + $0x111] sm:$0xff]  ;;  %v4226_v25 = vld [vmem:[#allocation2 + $0x67] sm:$0xff]  ;;  %v1205_v3 = vpack.c.bf16 %v1186_v36, %v951_v28  ;;  %1231 = vrot.lane.b32.xlu1 %v4083_v16, %s3315_s8 }
 0x161   : > { %5226 = vst [vmem:[#allocation27_spill] sm:$0xff] %v4208_v29  ;;  %vm4230_vm4 = vcmp.gt.s32.totalorder %v723_v23, 0  ;;  %v1085_v14 = vsel %vm4218_vm9, %v952_v2, 0.0  ;;  %vm4236_vm13 = vcmp.lt.s32.totalorder %v728_v34, 15  ;;  %vm4242_vm15 = vcmp.gt.s32.totalorder %v725_v4, 0  ;;  %1373 = vrot.lane.b32.xlu0 %v1092_v63, %s3315_s8  ;;  %v887_v36 = vld [vmem:[#allocation2 + $0x68] sm:$0xff] }
 0x162   : > { %vm4214_vm5 = vcmp.gt.s32.totalorder %v5227_v43, 0  ;;  %v982_v0 = vsel %vm4218_vm9, %v4122_v30, 0.0  ;;  %v1093_v23 = vpack.c.bf16 %v1065_v35, %v3783_v44  ;;  %v1011_v54 = vsel %vm4034_vm3, %v4109_v15, 0.0  ;;  %v4254_v27 = vld [vmem:[#allocation2 + $0x57] sm:$0xff]  ;;  %v4266_v30 = vld [vmem:[#allocation2 + $0x87] sm:$0xff]  ;;  %v4278_v56 = vld [vmem:[#allocation2 + $0x5f] sm:$0xff]  ;;  %3080 = vmatmul.mubr.msk.bf16.gmra.mrb[36].mxu0 %vm5240_vm10, %v1204_v58 }
 0x163   : > { %v4258_v4 = vld [vmem:[#allocation2 + $0x77] sm:$0xff]  ;;  %v4260_v34 = vpack.c.bf16 %v1085_v14, %v951_v28  ;;  %v4262_v43 = vpack.c.bf16 %v982_v0, %v949_v61  ;;  %v1188_v15 = vsel %vm4218_vm9, %v4222_v52, 0.0  ;;  %v1190_v35 = vsel %vm4236_vm13, %v4224_v17, 0.0  ;;  %v4280_v29 = vld [vmem:[#allocation2 + $0x8f] sm:$0xff]  ;;  %3083 = vmatprep.mubr.msk.bf16.mxu0 %vm5242_vm14, %v1205_v3 }
 0x164   : > { %v953_v63 = vld [vmem:[#allocation2 + $0xf9] sm:$0xff]  ;;  %v1087_v14 = vsel %vm4236_vm13, %v4222_v52, 0.0  ;;  %v695_v61 = vadd.s32 224, %v3550_v59  ;;  %v888_v0 = vld [vmem:[#allocation2 + $0x70] sm:$0xff]  ;;  %v984_v48 = vsel %vm4236_vm13, %v952_v2, 0.0  ;;  %v698_v57 = vadd.s32 248, %v3550_v59  ;;  %1279 = vrot.lane.b32.xlu1 %v990_v8, %s3317_s29  ;;  %vm5252_vm13 = vmmov %vm5240_vm10 }
 0x165   : > { %5238 = vst [vmem:[#allocation28_spill] sm:$0xff] %v4260_v34  ;;  %5239 = vst [vmem:[#allocation29_spill] sm:$0xff] %v4262_v43  ;;  %v4283_v13 = vpack.c.bf16 %v1087_v14, %v953_v63  ;;  %v839_v16 = vsel %vm4203_vm1, %v4226_v25, 0.0  ;;  %v4291_v43 = vld [vmem:[#allocation2 + $0x7f] sm:$0xff]  ;;  %v4294_v10 = vpack.c.bf16 %v984_v48, %v951_v28  ;;  %v697_v14 = vadd.s32 240, %v3550_v59  ;;  %1421 = vrot.lane.b32.xlu0 %v1142_v22, %s3317_s29  ;;  %v1056_v2 = vld [vmem:[#allocation2 + $0x109] sm:$0xff] }
 0x166   : > { %v727_v34 = vand.u32 15, %v695_v61  ;;  %v4297_v58 = vpack.c.bf16 %v4256_v20, %v839_v16  ;;  %v730_v26 = vand.u32 15, %v698_v57  ;;  %v843_v3 = vsel %vm3703_vm7, %v4266_v30, 0.0  ;;  %v5279_v1 = vld [vmem:[#allocation12_spill] sm:$0xff] }
 0x167   : > { %5241 = vst [vmem:[#allocation30_spill] sm:$0xff] %v4283_v13  ;;  %v837_v13 = vsel %vm4158_vm11, %v4254_v27, 0.0  ;;  %v841_v28 = vsel %vm4175_vm2, %v4258_v4, 0.0  ;;  %v4311_v16 = vpack.c.bf16 %v888_v0, %v887_v36  ;;  %v729_v59 = vand.u32 15, %v697_v14  ;;  %v4333_v0 = vld [vmem:[#allocation2 + $0xc7] sm:$0xff]  ;;  %v4335_v14 = vld [vmem:[#allocation2 + $0xcf] sm:$0xff] }
 0x168   : > { %5243 = vst [vmem:[#allocation31_spill] sm:$0xff] %v4297_v58  ;;  %v4314_v22 = vpack.c.bf16 %v4278_v56, %v837_v13  ;;  %v4317_v57 = vpack.c.bf16 %v4280_v29, %v843_v3  ;;  %v964_v61 = vsel %vm3864_vm12, %v3789_v47, 0.0  ;;  %v1206_v48 = vpack.c.bf16 %v1188_v15, %v953_v63  ;;  %v4337_v3 = vld [vmem:[#allocation2 + $0xd7] sm:$0xff] }
 0x169   : > { %vm4322_vm8 = vcmp.lt.s32.totalorder %v730_v26, 15  ;;  %v4327_v8 = vpack.c.bf16 %v4291_v43, %v841_v28  ;;  %v1040_v36 = vpack.c.bf16 %v4151_v46, %v1011_v54  ;;  %v1114_v13 = vsel %vm4034_vm3, %v4254_v27, 0.0  ;;  %1375 = vrot.lane.b32.xlu0 %v1093_v23, %s3315_s8  ;;  %v4343_v26 = vld [vmem:[#allocation2 + $0xdf] sm:$0xff]  ;;  %v4345_v46 = vld [vmem:[#allocation2 + $0xe7] sm:$0xff]  ;;  %v4347_v54 = vld [vmem:[#allocation2 + $0xf7] sm:$0xff] }
 0x16a   : > { %5244 = vst [vmem:[#allocation32_spill] sm:$0xff] %v4317_v57  ;;  %v1207_v47 = vpack.c.bf16 %v1190_v35, %v1056_v2  ;;  %v1089_v15 = vsel %vm4322_vm8, %v4224_v17, 0.0  ;;  %vm4349_vm3 = vcmp.gt.s32.totalorder %v727_v34, 0  ;;  %vm4355_vm9 = vcmp.gt.s32.totalorder %v729_v59, 0  ;;  %v4364_v57 = vld [vmem:[#allocation2 + $0xef] sm:$0xff]  ;;  %v4366_v34 = vld [vmem:[#allocation2 + $0xff] sm:$0xff]  ;;  %3084 = vmatmul.mubr.msk.bf16.gmra.mrb[40].mxu0 %vm5252_vm13, %v1206_v48 }
 0x16b   : > { %5247 = vst [vmem:[#allocation33_spill] sm:$0xff] %v4327_v8  ;;  %v4353_v28 = vpack.c.bf16 %v1089_v15, %v1056_v2  ;;  %v986_v17 = vsel %vm4322_vm8, %v4222_v52, 0.0  ;;  %1327 = vrot.lane.b32.xlu1 %v1040_v36, %s3316_s23  ;;  %v991_v23 = vpack.c.bf16 %v964_v61, %v3783_v44  ;;  %v847_v2 = vsel %vm3996_vm0, %v3795_v50, 0.0  ;;  %v885_v15 = vld [vmem:[#allocation2 + $0x58] sm:$0xff] }
 0x16c   : > { %v4368_v8 = vpack.c.bf16 %v986_v17, %v953_v63  ;;  %v849_v59 = vsel %vm4214_vm5, %v4064_v45, 0.0  ;;  %v4378_v52 = vpack.c.bf16 %v3824_v12, %v847_v2  ;;  %v851_v63 = vsel %vm4230_vm4, %v4333_v0, 0.0  ;;  %3087 = vmatprep.mubr.msk.bf16.mxu0 %vm5240_vm10, %v1207_v47  ;;  %v886_v17 = vld [vmem:[#allocation2 + $0x60] sm:$0xff] }
 0x16d   : > { %v4381_v44 = vpack.c.bf16 %v4070_v32, %v849_v59  ;;  %v853_v50 = vsel %vm4242_vm15, %v4337_v3, 0.0  ;;  %v4391_v45 = vpack.c.bf16 %v4335_v14, %v851_v63  ;;  %v855_v12 = vsel %vm4349_vm3, %v4345_v46, 0.0  ;;  %1459 = vrot.lane.b32.xlu0 %v4311_v16, %s3316_s23 }
 0x16e   : > { %v4394_v61 = vpack.c.bf16 %v4343_v26, %v853_v50  ;;  %v857_v32 = vsel %vm4355_vm9, %v4347_v54, 0.0  ;;  %v4405_v48 = vpack.c.bf16 %v4364_v57, %v855_v12  ;;  %v1143_v47 = vpack.c.bf16 %v4278_v56, %v1114_v13  ;;  %v5253_v50 = vld [vmem:[#allocation17_spill] sm:$0xff] }
 0x16f   : > { %v4408_v36 = vpack.c.bf16 %v4366_v34, %v857_v32  ;;  %1281 = vrot.lane.b32.xlu1 %v991_v23, %s3317_s29  ;;  %v1013_v2 = vsel %vm4040_vm6, %v4254_v27, 0.0  ;;  %v4418_v59 = vpack.c.bf16 %v886_v17, %v885_v15  ;;  %v1067_v23 = vsel %vm3864_vm12, %v3818_v7, 0.0  ;;  %v5255_v32 = vld [vmem:[#allocation16_spill] sm:$0xff] }
 0x170   : > { %v1041_v63 = vpack.c.bf16 %v4278_v56, %v1013_v2  ;;  %v1094_v13 = vpack.c.bf16 %v1067_v23, %v3816_v5  ;;  %v1116_v27 = vsel %vm4040_vm6, %v4226_v25, 0.0  ;;  %vm5254_vm14 = vnez %v5253_v50  ;;  %v891_v2 = vld [vmem:[#allocation2 + $0x88] sm:$0xff] }
 0x171   : > { %1423 = vrot.lane.b32.xlu0 %v1143_v47, %s3317_s29  ;;  %v966_v56 = vsel %vm5254_vm14, %v3818_v7, 0.0  ;;  %v1144_v6 = vpack.c.bf16 %v4256_v20, %v1116_v27  ;;  %v1069_v47 = vsel %vm5254_vm14, %v5255_v32, 0.0  ;;  %v1015_v18 = vsel %vm4158_vm11, %v4226_v25, 0.0  ;;  %v5256_v7 = vld [vmem:[#allocation15_spill] sm:$0xff]  ;;  %v889_v27 = vld [vmem:[#allocation2 + $0x78] sm:$0xff] }
 0x172   : > { %v992_v12 = vpack.c.bf16 %v966_v56, %v3816_v5  ;;  %v1095_v15 = vpack.c.bf16 %v1069_v47, %v5256_v7  ;;  %v1042_v17 = vpack.c.bf16 %v4256_v20, %v1015_v18  ;;  %vm5257_vm12 = vnez %v5176_v38  ;;  %v890_v38 = vld [vmem:[#allocation2 + $0x80] sm:$0xff]  ;;  %v5259_v18 = vld [vmem:[#allocation20_spill] sm:$0xff] }
 0x173   : > { %1237 = vrot.lane.b32.xlu1 %v4311_v16, %s3315_s8  ;;  %v968_v5 = vsel %vm5257_vm12, %v5255_v32, 0.0  ;;  %v1017_v50 = vsel %vm4203_vm1, %v4258_v4, 0.0  ;;  %v4470_v19 = vpack.c.bf16 %v890_v38, %v889_v27  ;;  %v1120_v47 = vsel %vm4203_vm1, %v4266_v30, 0.0  ;;  %v899_v27 = vld [vmem:[#allocation2 + $0xc8] sm:$0xff]  ;;  %v900_v38 = vld [vmem:[#allocation2 + $0xd0] sm:$0xff] }
 0x174   : > { %v993_v25 = vpack.c.bf16 %v968_v5, %v5256_v7  ;;  %v1043_v56 = vpack.c.bf16 %v4291_v43, %v1017_v50  ;;  %v1146_v7 = vpack.c.bf16 %v4280_v29, %v1120_v47  ;;  %v5262_v5 = vld [vmem:[#allocation22_spill] sm:$0xff]  ;;  %v1019_v60 = vsel %vm4175_vm2, %v4266_v30, 0.0 }
 0x175   : > { %1457 = vrot.lane.b32.xlu0 %v4418_v59, %s3316_s23  ;;  %vm5271_vm13 = vcmask 523264   ;;  %v1132_v31 = vsel %vm4230_vm4, %v4345_v46, 0.0 }
 0x177   : > { %1329 = vrot.lane.b32.xlu1 %v1041_v63, %s3316_s23  ;;  %v892_v63 = vld [vmem:[#allocation2 + $0x90] sm:$0xff] }
 0x178   : > { %v4454_v23 = vpack.c.bf16 %v892_v63, %v891_v2  ;;  %v1128_v63 = vsel %vm3996_vm0, %v4333_v0, 0.0  ;;  %vm5264_vm0 = vnez %v5263_v11 }
 0x179   : > { %1377 = vrot.lane.b32.xlu0 %v1094_v13, %s3315_s8  ;;  %v1118_v13 = vsel %vm4158_vm11, %v4258_v4, 0.0 }
 0x17a   : > { %v1145_v20 = vpack.c.bf16 %v4291_v43, %v1118_v13  ;;  %v1021_v43 = vsel %vm3703_vm7, %v4072_v9, 0.0  ;;  %vm5265_vm7 = vmmov %vm5240_vm10 }
 0x17b   : > { %1235 = vrot.lane.b32.xlu1 %v4418_v59, %s3315_s8  ;;  %v1045_v32 = vpack.c.bf16 %v4111_v49, %v1021_v43  ;;  %v796_v43 = vld [vmem:[#allocation2 + $0xf] sm:$0xff]  ;;  %vm5266_vm6 = vmmov %vm5265_vm7 }
 0x17c   : > { %vm5268_vm11 = vmmov %vm5266_vm6 }
 0x17d   : > { %1425 = vrot.lane.b32.xlu0 %v1144_v6, %s3317_s29  ;;  %v1122_v6 = vsel %vm4175_vm2, %v4072_v9, 0.0  ;;  %v5260_v9 = vld [vmem:[#allocation21_spill] sm:$0xff]  ;;  %vm1563_vm2 = vcmask 785408   ;;  %vm5270_vm1 = vmmov %vm5266_vm6 }
 0x17e   : > { %v1147_v4 = vpack.c.bf16 %v4111_v49, %v1122_v6  ;;  %v5261_v49 = vld [vmem:[#allocation11_spill] sm:$0xff]  ;;  %v1044_v6 = vpack.c.bf16 %v4280_v29, %v1019_v60  ;;  %vm5272_vm10 = vmmov %vm5271_vm13 }
 0x17f   : > { %1283 = vrot.lane.b32.xlu1 %v992_v12, %s3317_s29  ;;  %v5258_v12 = vld [vmem:[#allocation19_spill] sm:$0xff]  ;;  %vm5273_vm14 = vmmov %vm5272_vm10 }
 0x180   : > { %vm5278_vm12 = vmmov %vm5270_vm1 }
 0x181   : > { %1379 = vrot.lane.b32.xlu0 %v1095_v15, %s3315_s8  ;;  %v897_v15 = vld [vmem:[#allocation2 + $0xb8] sm:$0xff] }
 0x183   : > { %1331 = vrot.lane.b32.xlu1 %v1042_v17, %s3316_s23  ;;  %v898_v17 = vld [vmem:[#allocation2 + $0xc0] sm:$0xff] }
 0x185   : > { %1463 = vrot.lane.b32.xlu0 %v4454_v23, %s3316_s23 }
 0x187   : > { %1285 = vrot.lane.b32.xlu1 %v993_v25, %s3317_s29 }
 0x189   : > { %1427 = vrot.lane.b32.xlu0 %v1145_v20, %s3317_s29  ;;  %v1150_v20 = vpack.c.bf16 %v4335_v14, %v1128_v63  ;;  %v5267_v63 = vld [vmem:[#allocation13_spill] sm:$0xff] }
 0x18b   : > { %1241 = vrot.lane.b32.xlu1 %v4454_v23, %s3315_s8 }
 0x18d   : > { %1461 = vrot.lane.b32.xlu0 %v4470_v19, %s3316_s23 }
 0x18f   : > { %1333 = vrot.lane.b32.xlu1 %v1043_v56, %s3316_s23  ;;  %v4525_v56 = vpack.c.bf16 %v900_v38, %v899_v27  ;;  %v5269_v27 = vld [vmem:[#allocation14_spill] sm:$0xff] }
 0x191   : > { %1383 = vrot.lane.b32.xlu0 %v5258_v12, %s3315_s8  ;;  %v795_v12 = vld [vmem:[#allocation2 + $0x7] sm:$0xff] }
 0x192   : > { %v827_v30 = vsel %vm5264_vm0, %v795_v12, 0.0 }
 0x193   : > { %1239 = vrot.lane.b32.xlu1 %v4470_v19, %s3315_s8  ;;  %v859_v29 = vpack.c.bf16 %v796_v43, %v827_v30 }
 0x195   : > { %1431 = vrot.lane.b32.xlu0 %v1147_v4, %s3317_s29 }
 0x197   : > { %1289 = vrot.lane.b32.xlu1 %v4008_v42, %s3317_s29  ;;  %v4501_v42 = vpack.c.bf16 %v898_v17, %v897_v15  ;;  %v901_v15 = vld [vmem:[#allocation2 + $0xd8] sm:$0xff]  ;;  %v902_v17 = vld [vmem:[#allocation2 + $0xe0] sm:$0xff] }
 0x199   : > { %1381 = vrot.lane.b32.xlu0 %v5259_v18, %s3315_s8 }
 0x19b   : > { %1337 = vrot.lane.b32.xlu1 %v1045_v32, %s3316_s23 }
 0x19d   : > { %1429 = vrot.lane.b32.xlu0 %v1146_v7, %s3317_s29 }
 0x19f   : > { %1339 = vrot.lane.b32.xlu1 %v5260_v9, %s3316_s23 }
 0x1a1   : > { %1469 = vrot.lane.b32.xlu0 %v4501_v42, %s3316_s23 }
 0x1a2   : > { %v1274_v2 = vpop.permute.xlu1 %1273 }
 0x1a3   : > { %1245 = vrot.lane.b32.xlu1 %v5261_v49, %s3315_s8  ;;  %v1452_v53 = vpop.permute.xlu0 %1451 }
 0x1a5   : > { %1389 = vrot.lane.b32.xlu0 %v5262_v5, %s3315_s8 }
 0x1a6   : > { %v4514_v13 = vpop.permute.xlu1 %1229 }
 0x1a7   : > { %1293 = vrot.lane.b32.xlu1 %v4066_v41, %s3317_s29  ;;  %v1468_v25 = vpop.permute.xlu0 %1467 }
 0x1a9   : > { %1437 = vrot.lane.b32.xlu0 %v1150_v20, %s3317_s29  ;;  %v4549_v20 = vpack.c.bf16 %v902_v17, %v901_v15 }
 0x1aa   : > { %v1322_v41 = vpop.permute.xlu1 %1321 }
 0x1ab   : > { %1287 = vrot.lane.b32.xlu1 %v4092_v37, %s3317_s29  ;;  %v4523_v50 = vpop.permute.xlu0 %1465  ;;  %v1130_v37 = vsel %vm4214_vm5, %v4337_v3, 0.0 }
 0x1ac   : > { %v1151_v18 = vpack.c.bf16 %v4343_v26, %v1130_v37 }
 0x1ad   : > { %1471 = vrot.lane.b32.xlu0 %v4525_v56, %s3316_s23 }
 0x1ae   : > { %v1228_v32 = vpop.permute.xlu1 %1227 }
 0x1af   : > { %1335 = vrot.lane.b32.xlu1 %v1044_v6, %s3316_s23  ;;  %v1370_v4 = vpop.permute.xlu0 %1369 }
 0x1b0   : > { %v1614_v38 = vsel %vm5270_vm1, %v5269_v27, %v1370_v4 }
 0x1b1   : > { %1391 = vrot.lane.b32.xlu0 %v4113_v24, %s3315_s8  ;;  %v1485_v24 = vsel %vm5266_vm6, %v859_v29, %v1226_v55  ;;  %v1027_v55 = vsel %vm4214_vm5, %v4333_v0, 0.0  ;;  %v1152_v0 = vpack.c.bf16 %v4364_v57, %v1132_v31  ;;  %vm5274_vm5 = vmmov %vm5272_vm10  ;;  %v1053_v31 = vld [vmem:[#allocation2 + $0x108] sm:$0xff] }
 0x1b2   : > { %v1244_v7 = vpop.permute.xlu1 %1243  ;;  %v1532_v43 = vsel %vm5273_vm14, %v1485_v24, %v1274_v2  ;;  %v1048_v29 = vpack.c.bf16 %v4335_v14, %v1027_v55  ;;  %v903_v2 = vld [vmem:[#allocation2 + $0xe8] sm:$0xff]  ;;  %vm5281_vm0 = vmmov %vm5274_vm5  ;;  %v905_v55 = vld [vmem:[#allocation2 + $0xf8] sm:$0xff] }
 0x1b3   : > { %1341 = vrot.lane.b32.xlu1 %v4116_v21, %s3316_s23  ;;  %v1386_v47 = vpop.permute.xlu0 %1385  ;;  %v1512_v9 = vsel %vm5265_vm7, %v4131_v62, %v1244_v7  ;;  %v1565_v11 = vsel %vm1563_vm2, %v1532_v43, %v1322_v41  ;;  %v5275_v7 = vld [vmem:[#allocation25_spill] sm:$0xff]  ;;  %vm5282_vm7 = vmmov %vm5281_vm0  ;;  %v906_v43 = vld [vmem:[#allocation2 + $0x100] sm:$0xff] }
 0x1b4   : > { %v1638_v21 = vsel %vm5268_vm11, %v5267_v63, %v1386_v47  ;;  %v1134_v63 = vsel %vm4242_vm15, %v4347_v54, 0.0  ;;  %vm5283_vm6 = vmmov %vm5270_vm1 }
 0x1b5   : > { %1439 = vrot.lane.b32.xlu0 %v1151_v18, %s3317_s29  ;;  %vm5284_vm11 = vmmov %vm5281_vm0 }
 0x1b6   : > { %v1418_v62 = vpop.permute.xlu1 %1417  ;;  %vm5296_vm14 = vmmov %vm5270_vm1 }
 0x1b7   : > { %1247 = vrot.lane.b32.xlu1 %v4501_v42, %s3315_s8  ;;  %v1434_v5 = vpop.permute.xlu0 %1433  ;;  %v1661_v6 = vsel %vm5272_vm10, %v1614_v38, %v1418_v62  ;;  %vm5290_vm10 = vmmov %vm5281_vm0 }
 0x1b8   : > { %v1677_v60 = vsel %vm5271_vm13, %v1638_v21, %v1434_v5  ;;  %v1693_v4 = vsel %vm1563_vm2, %v1661_v6, %v1452_v53  ;;  %v5277_v21 = vld [vmem:[#allocation9_spill] sm:$0xff]  ;;  %vm5289_vm13 = vmmov %vm5281_vm0 }
 0x1b9   : > { %1473 = vrot.lane.b32.xlu0 %v4549_v20, %s3316_s23  ;;  %v4561_v12 = vsel %vm1563_vm2, %v1677_v60, %v1468_v25  ;;  %1971 = vmatprep.mubr.bf16.mxu1 %v1693_v4  ;;  %v904_v25 = vld [vmem:[#allocation2 + $0xf0] sm:$0xff] }
 0x1ba   : > { %1972 = vmatmul.mubr.bf16.vlgmr.msra.gmra.mrb[16].mxu1 %v1565_v11  ;;  %v1276_v37 = vpop.permute.xlu1 %1275  ;;  %v4579_v41 = vpack.c.bf16 %v904_v25, %v903_v2  ;;  %v5285_v2 = vld [vmem:[#allocation29_spill] sm:$0xff] }
 0x1bb   : > { %1295 = vrot.lane.b32.xlu1 %v4140_v51, %s3317_s29  ;;  %v1372_v30 = vpop.permute.xlu0 %1371 }
 0x1bc   : > { %v1617_v5 = vsel %vm5278_vm12, %v5277_v21, %v1372_v30  ;;  %v4614_v30 = vpack.c.bf16 %v906_v43, %v905_v55  ;;  %v1004_v21 = vld [vmem:[#allocation2 + $0x10f] sm:$0xff]  ;;  %v1160_v55 = vld [vmem:[#allocation2 + $0x121] sm:$0xff]  ;;  %vm5298_vm12 = vmmov %vm5281_vm0 }
 0x1bd   : > { %1393 = vrot.lane.b32.xlu0 %v4162_v39, %s3315_s8  ;;  %v1029_v39 = vsel %vm4230_vm4, %v4337_v3, 0.0  ;;  %vm5280_vm4 = vmmov %vm5270_vm1 }
 0x1be   : > { %v1324_v53 = vpop.permute.xlu1 %1323  ;;  %v1049_v24 = vpack.c.bf16 %v4343_v26, %v1029_v39  ;;  %v1488_v3 = vsel %vm5280_vm4, %v5279_v1, %v1228_v32  ;;  %v1153_v26 = vpack.c.bf16 %v4366_v34, %v1134_v63  ;;  %v1003_v39 = vld [vmem:[#allocation2 + $0x107] sm:$0xff]  ;;  %v5291_v1 = vld [vmem:[#allocation30_spill] sm:$0xff]  ;;  %vm5299_vm4 = vmmov %vm5270_vm1 }
 0x1bf   : > { %1343 = vrot.lane.b32.xlu1 %v1048_v29, %s3316_s23  ;;  %v1456_v51 = vpop.permute.xlu0 %1455  ;;  %v1534_v60 = vsel %vm5282_vm7, %v1488_v3, %v1276_v37 }
 0x1c0   : > { %v1568_v4 = vsel %vm1563_vm2, %v1534_v60, %v1324_v53  ;;  %v1031_v53 = vsel %vm4242_vm15, %v4345_v46, 0.0  ;;  %v5287_v46 = vld [vmem:[#allocation23_spill] sm:$0xff]  ;;  %vm5288_vm15 = vmmov %vm5270_vm1  ;;  %v1106_v60 = vld [vmem:[#allocation2 + $0x117] sm:$0xff] }
 0x1c1   : > { %1441 = vrot.lane.b32.xlu0 %v1152_v0, %s3317_s29  ;;  %v1054_v0 = vld [vmem:[#allocation2 + $0x110] sm:$0xff] }
 0x1c2   : > { %v1292_v47 = vpop.permute.xlu1 %1291  ;;  %v4626_v25 = vpack.c.bf16 %v1054_v0, %v1053_v31  ;;  %v1138_v31 = vsel %vm4355_vm9, %v1106_v60, 0.0 }
 0x1c3   : > { %1249 = vrot.lane.b32.xlu1 %v4525_v56, %s3315_s8  ;;  %v1388_v14 = vpop.permute.xlu0 %1387  ;;  %v4582_v18 = vsel %vm5274_vm5, %v1512_v9, %v1292_v47  ;;  %v5276_v9 = vld [vmem:[#allocation28_spill] sm:$0xff]  ;;  %v1050_v47 = vpack.c.bf16 %v4364_v57, %v1031_v53  ;;  %v1136_v57 = vsel %vm4349_vm3, %v1003_v39, 0.0  ;;  %vm5297_vm5 = vmmov %vm5281_vm0 }
 0x1c4   : > { %v1641_v32 = vsel %vm5283_vm6, %v5261_v49, %v1388_v14  ;;  %vm5302_vm7 = vmmov %vm5297_vm5 }
 0x1c5   : > { %1475 = vrot.lane.b32.xlu0 %v4579_v41, %s3316_s23 }
 0x1c6   : > { %v1278_v17 = vpop.permute.xlu1 %1277 }
 0x1c7   : > { %1297 = vrot.lane.b32.xlu1 %v5275_v7, %s3317_s29  ;;  %v1420_v15 = vpop.permute.xlu0 %1419  ;;  %v5286_v7 = vld [vmem:[#allocation24_spill] sm:$0xff] }
 0x1c8   : > { %v1663_v27 = vsel %vm5281_vm0, %v1617_v5, %v1420_v15  ;;  %vm5301_vm0 = vmmov %vm5270_vm1 }
 0x1c9   : > { %1395 = vrot.lane.b32.xlu0 %v5276_v9, %s3315_s8  ;;  %vm5304_vm6 = vmmov %vm5301_vm0 }
 0x1ca   : > { %v4605_v62 = vpop.permute.xlu1 %1233 }
 0x1cb   : > { %1345 = vrot.lane.b32.xlu1 %v1049_v24, %s3316_s23  ;;  %v1454_v38 = vpop.permute.xlu0 %1453  ;;  %v1491_v24 = vsel %vm5288_vm15, %v5287_v46, %v4514_v13 }
 0x1cc   : > { %v1696_v6 = vsel %vm1563_vm2, %v1663_v27, %v1454_v38  ;;  %v1536_v5 = vsel %vm5290_vm10, %v1491_v24, %v1278_v17  ;;  %v1154_v38 = vpack.c.bf16 %v1004_v21, %v1136_v57  ;;  %v1033_v17 = vsel %vm4349_vm3, %v4347_v54, 0.0  ;;  %vm5292_vm3 = vmmov %vm5270_vm1  ;;  %v1157_v54 = vld [vmem:[#allocation2 + $0x120] sm:$0xff] }
 0x1cd   : > { %1443 = vrot.lane.b32.xlu0 %v1153_v26, %s3317_s29  ;;  %1979 = vmatprep.mubr.bf16.mxu1 %v1696_v6  ;;  %v1159_v6 = vld [vmem:[#allocation2 + $0x119] sm:$0xff]  ;;  %vm5309_vm10 = vmmov %vm5301_vm0 }
 0x1ce   : > { %1980 = vmatmul.mubr.bf16.gmra.mrb[20].mxu1 %v1568_v4  ;;  %v1326_v29 = vpop.permute.xlu1 %1325 }
 0x1cf   : > { %1251 = vrot.lane.b32.xlu1 %v4549_v20, %s3315_s8  ;;  %v1436_v11 = vpop.permute.xlu0 %1435  ;;  %v1571_v13 = vsel %vm1563_vm2, %v1536_v5, %v1326_v29  ;;  %v1107_v29 = vld [vmem:[#allocation2 + $0x11f] sm:$0xff] }
 0x1d0   : > { %v4617_v37 = vsel %vm5284_vm11, %v1641_v32, %v1436_v11  ;;  %v1051_v11 = vpack.c.bf16 %v4366_v34, %v1033_v17  ;;  %v1155_v40 = vpack.c.bf16 %v1107_v29, %v1138_v31  ;;  %v5293_v34 = vld [vmem:[#allocation18_spill] sm:$0xff]  ;;  %vm5305_vm11 = vmmov %vm5301_vm0 }
 0x1d1   : > { %1477 = vrot.lane.b32.xlu0 %v4614_v30, %s3316_s23 }
 0x1d2   : > { %v1232_v14 = vpop.permute.xlu1 %1231 }
 0x1d3   : > { %1299 = vrot.lane.b32.xlu1 %v5285_v2, %s3317_s29  ;;  %v1374_v49 = vpop.permute.xlu0 %1373 }
 0x1d4   : > { %v1620_v15 = vsel %vm5270_vm1, %v5286_v7, %v1374_v49  ;;  %v5295_v49 = vld [vmem:[#allocation27_spill] sm:$0xff] }
 0x1d5   : > { %1479 = vrot.lane.b32.xlu0 %v4626_v25, %s3316_s23 }
 0x1d6   : > { %v1280_v9 = vpop.permute.xlu1 %1279 }
 0x1d7   : > { %1347 = vrot.lane.b32.xlu1 %v1050_v47, %s3316_s23  ;;  %v1422_v33 = vpop.permute.xlu0 %1421 }
 0x1d8   : > { %v1665_v63 = vsel %vm5289_vm13, %v1620_v15, %v1422_v33  ;;  %vm5308_vm13 = vmmov %vm5301_vm0 }
 0x1d9   : > { %1397 = vrot.lane.b32.xlu0 %v5291_v1, %s3315_s8  ;;  %v1699_v3 = vsel %vm1563_vm2, %v1665_v63, %v1456_v51  ;;  %v1192_v51 = vsel %vm4322_vm8, %v1160_v55, 0.0  ;;  %vm5294_vm8 = vmmov %vm5270_vm1  ;;  %v1035_v63 = vsel %vm4355_vm9, %v1003_v39, 0.0 }
 0x1da   : > { %1987 = vmatprep.mubr.bf16.mxu1 %v1699_v3  ;;  %v1208_v4 = vpack.c.bf16 %v1192_v51, %v1159_v6  ;;  %v1052_v5 = vpack.c.bf16 %v1004_v21, %v1035_v63  ;;  %v5300_v3 = vld [vmem:[#allocation26_spill] sm:$0xff]  ;;  %vm5303_vm9 = vmmov %vm5297_vm5 }
 0x1db   : > { %1253 = vrot.lane.b32.xlu1 %v4579_v41, %s3315_s8  ;;  %v1376_v27 = vpop.permute.xlu0 %1375  ;;  %1988 = vmatmul.mubr.bf16.gmra.mrb[24].mxu1 %v1571_v13  ;;  %v1497_v13 = vsel %vm5301_vm0, %v5300_v3, %v4605_v62  ;;  %vm5306_vm1 = vmmov %vm5297_vm5 }
 0x1dc   : > { %3088 = vmatmul.mubr.msk.bf16.gmra.mrb[44].mxu0 %vm5292_vm3, %v1208_v4  ;;  %v1623_v2 = vsel %vm5294_vm8, %v5293_v34, %v1376_v27  ;;  %vm5307_vm15 = vmmov %vm5306_vm1 }
 0x1dd   : > { %v1328_v26 = vpop.permute.xlu1 %1327  ;;  %1445 = vrot.lane.b32.xlu0 %v1154_v38, %s3317_s29  ;;  %vm5311_vm3 = vmmov %vm5301_vm0 }
 0x1de   : > { %vm5312_vm8 = vmmov %vm5306_vm1 }
 0x1df   : > { %1301 = vrot.lane.b32.xlu1 %v4294_v10, %s3317_s29  ;;  %v1460_v43 = vpop.permute.xlu0 %1459  ;;  %v1156_v10 = vld [vmem:[#allocation2 + $0x118] sm:$0xff] }
 0x1e0   : > { %v1158_v53 = vpack.c.bf16 %v1157_v54, %v1156_v10 }
 0x1e1   : > { %v1282_v32 = vpop.permute.xlu1 %1281  ;;  %1399 = vrot.lane.b32.xlu0 %v4353_v28, %s3315_s8  ;;  %v1494_v28 = vsel %vm5296_vm14, %v5295_v49, %v1232_v14  ;;  %vm5313_vm14 = vmmov %vm5306_vm1 }
 0x1e2   : > { %v1538_v15 = vsel %vm5298_vm12, %v1494_v28, %v1280_v9  ;;  %v1540_v27 = vsel %vm5303_vm9, %v1497_v13, %v1282_v32  ;;  %v5310_v28 = vld [vmem:[#allocation31_spill] sm:$0xff]  ;;  %vm5316_vm12 = vmmov %vm5301_vm0 }
 0x1e3   : > { %1349 = vrot.lane.b32.xlu1 %v1051_v11, %s3316_s23  ;;  %v1424_v58 = vpop.permute.xlu0 %1423  ;;  %v1574_v24 = vsel %vm1563_vm2, %v1538_v15, %v1328_v26  ;;  %vm5320_vm9 = vmmov %vm5301_vm0 }
 0x1e4   : > { %v1667_v47 = vsel %vm5297_vm5, %v1623_v2, %v1424_v58  ;;  %vm5314_vm5 = vmmov %vm5306_vm1 }
 0x1e5   : > { %v1238_v0 = vpop.permute.xlu1 %1237  ;;  %1447 = vrot.lane.b32.xlu0 %v1155_v40, %s3317_s29 }
 0x1e7   : > { %1255 = vrot.lane.b32.xlu1 %v4614_v30, %s3315_s8  ;;  %v1458_v7 = vpop.permute.xlu0 %1457 }
 0x1e8   : > { %v1702_v46 = vsel %vm1563_vm2, %v1667_v47, %v1458_v7  ;;  %v1503_v47 = vsel %vm5311_vm3, %v5310_v28, %v1238_v0  ;;  %vm5326_vm3 = vmmov %vm5306_vm1 }
 0x1e9   : > { %v1330_v33 = vpop.permute.xlu1 %1329  ;;  %1481 = vrot.lane.b32.xlu0 %v1158_v53, %s3316_s23  ;;  %1995 = vmatprep.mubr.bf16.mxu1 %v1702_v46 }
 0x1ea   : > { %1996 = vmatmul.mubr.bf16.gmra.mrb[28].mxu1 %v1574_v24  ;;  %v1577_v21 = vsel %vm1563_vm2, %v1540_v27, %v1330_v33 }
 0x1eb   : > { %1303 = vrot.lane.b32.xlu1 %v4368_v8, %s3317_s29  ;;  %v1378_v14 = vpop.permute.xlu0 %1377  ;;  %s3318_s29 = smov [#allocation6]  }
 0x1ec   : > { %v1626_v9 = vsel %vm5299_vm4, %v4418_v59, %v1378_v14  ;;  %vm5317_vm4 = vmmov %vm5306_vm1  ;;  %s3247_s20 = sshll.u32 %s3318_s29, 4  ;;  %s3248_s20 = int_to_ptr.vmem [resolvable:$false] %s3247_s20 }
 0x1ed   : > { %v1236_v57 = vpop.permute.xlu1 %1235  ;;  %s3249_s22 = scalar_lea.vmem %s3248_s20, 8192  ;;  %p3250_p8 = scmp.lt.s32.totalorder %s5063_s11, %s3248_s20 }
 0x1ee   : > { %v1500_v55 = vsel %vm5305_vm11, %v4314_v22, %v1236_v57  ;;  %vm5322_vm11 = vmmov %vm5301_vm0 }
 0x1ef   : > { %1351 = vrot.lane.b32.xlu1 %v1052_v5, %s3316_s23  ;;  %v1426_v1 = vpop.permute.xlu0 %1425  ;;  %s5061_s23 = scalar_lea.hbm %s5120_s7, %s2846_s17 }
 0x1f0   : > { %v1669_v35 = vsel %vm5302_vm7, %v1626_v9, %v1426_v1  ;;  %vm5319_vm7 = vmmov %vm5306_vm1 }
 0x1f1   : > { %v1284_v39 = vpop.permute.xlu1 %1283  ;;  %v1705_v8 = vsel %vm1563_vm2, %v1669_v35, %v1460_v43 }
 0x1f2   : > { %2003 = vmatprep.mubr.bf16.mxu1 %v1705_v8  ;;  %v1542_v43 = vsel %vm5307_vm15, %v1500_v55, %v1284_v39  ;;  %vm5323_vm15 = vmmov %vm5301_vm0 }
 0x1f3   : > { %v1380_v38 = vpop.permute.xlu0 %1379  ;;  %2004 = vmatmul.mubr.bf16.gmra.mrb[32].mxu1 %v1577_v21  ;;  %v5315_v21 = vld [vmem:[#allocation33_spill] sm:$0xff] }
 0x1f4   : > { %v1629_v62 = vsel %vm5304_vm6, %v4311_v16, %v1380_v38  ;;  %vm5321_vm6 = vmmov %vm5306_vm1 }
 0x1f5   : > { %v1332_v26 = vpop.permute.xlu1 %1331 }
 0x1f6   : > { %v1580_v29 = vsel %vm1563_vm2, %v1542_v43, %v1332_v26 }
 0x1f7   : > { %v1464_v17 = vpop.permute.xlu0 %1463 }
 0x1f9   : > { %v1286_v59 = vpop.permute.xlu1 %1285 }
 0x1fa   : > { %v1544_v24 = vsel %vm5314_vm5, %v1503_v47, %v1286_v59  ;;  %vm5329_vm5 = vmmov %vm5301_vm0 }
 0x1fb   : > { %v1428_v60 = vpop.permute.xlu0 %1427 }
 0x1fc   : > { %v1671_v51 = vsel %vm5306_vm1, %v1629_v62, %v1428_v60 }
 0x1fd   : > { %v1242_v6 = vpop.permute.xlu1 %1241 }
 0x1ff   : > { %v1462_v4 = vpop.permute.xlu0 %1461 }
 0x200   : > { %v1708_v11 = vsel %vm1563_vm2, %v1671_v51, %v1462_v4 }
 0x201   : > { %v1334_v32 = vpop.permute.xlu1 %1333  ;;  %2011 = vmatprep.mubr.bf16.mxu1 %v1708_v11 }
 0x202   : > { %2012 = vmatmul.mubr.bf16.gmra.mrb[36].mxu1 %v1580_v29 }
 0x203   : > { %v1384_v31 = vpop.permute.xlu0 %1383 }
 0x204   : > { %v1635_v22 = vsel %vm5308_vm13, %v4454_v23, %v1384_v31  ;;  %vm5324_vm13 = vmmov %vm5306_vm1 }
 0x205   : > { %v1240_v10 = vpop.permute.xlu1 %1239 }
 0x206   : > { %v1506_v38 = vsel %vm5316_vm12, %v5315_v21, %v1240_v10  ;;  %vm5330_vm12 = vmmov %vm5306_vm1 }
 0x207   : > { %v1432_v54 = vpop.permute.xlu0 %1431 }
 0x208   : > { %v1675_v7 = vsel %vm5312_vm8, %v1635_v22, %v1432_v54  ;;  %vm5327_vm8 = vmmov %vm5301_vm0 }
 0x209   : > { %v1290_v58 = vpop.permute.xlu1 %1289  ;;  %v1714_v0 = vsel %vm1563_vm2, %v1675_v7, %v4523_v50 }
 0x20b   : > { %v1382_v16 = vpop.permute.xlu0 %1381 }
 0x20c   : > { %v1632_v34 = vsel %vm5309_vm10, %v4470_v19, %v1382_v16  ;;  %v1583_v19 = vsel %vm1563_vm2, %v1544_v24, %v1334_v32  ;;  %v5318_v32 = vld [vmem:[#allocation32_spill] sm:$0xff]  ;;  %vm5325_vm10 = vmmov %vm5301_vm0 }
 0x20d   : > { %v1338_v40 = vpop.permute.xlu1 %1337  ;;  %v4696_v53 = vpop.f32.mrb[16].mxu0  ;;  %v1509_v11 = vsel %vm5301_vm0, %v5318_v32, %v1242_v6  ;;  %v3211_v6 = vld [vmem:[%s5118_s5] sm:$0xff]  }
 0x20e   : > { %v4702_v49 = vpop.f32.mrb[17].mxu0  ;;  %v1548_v10 = vsel %vm5319_vm7, %v1509_v11, %v1290_v58  ;;  %v3212_v58 = vld [vmem:[%s5118_s5 + $0x8] sm:$0xff]   ;;  %3091 = vmatprep.subr.bf16.mxu0 %v3211_v6 }
 0x20f   : > { %v1430_v2 = vpop.permute.xlu0 %1429  ;;  %v4708_v46 = vpop.f32.mrb[18].mxu0  ;;  %v1589_v22 = vsel %vm1563_vm2, %v1548_v10, %v1338_v40  ;;  %3092 = vmatpush3.bf16.msra.mxu0 %v3211_v6 }
 0x210   : > { %v1673_v15 = vsel %vm5313_vm14, %v1632_v34, %v1430_v2  ;;  %v4712_v63 = vpop.f32.mrb[19].mxu0  ;;  %3093 = vmatprep.subr.bf16.mxu0 %v3212_v58  ;;  %vm5328_vm14 = vmmov %vm5306_vm1 }
 0x211   : > { %v1340_v33 = vpop.permute.xlu1 %1339  ;;  %v1711_v23 = vsel %vm1563_vm2, %v1673_v15, %v1464_v17 }
 0x212   : > { %2019 = vmatprep.mubr.bf16.mxu1 %v1711_v23 }
 0x213   : > { %v1470_v14 = vpop.permute.xlu0 %1469  ;;  %2020 = vmatmul.mubr.bf16.gmra.mrb[40].mxu1 %v1583_v19  ;;  %v1592_v19 = vsel %vm1563_vm2, %v4582_v18, %v1340_v33  ;;  %3094 = vmatpush3.bf16.msra.mxu0 %v3212_v58 }
 0x214   : > { %2027 = vmatprep.mubr.bf16.mxu1 %v1714_v0 }
 0x215   : > { %v1246_v57 = vpop.permute.xlu1 %1245  ;;  %v4717_v5 = vpop.f32.mrb[20].mxu0 }
 0x216   : > { %v4719_v1 = vpop.f32.mrb[21].mxu0 }
 0x217   : > { %v1390_v9 = vpop.permute.xlu0 %1389  ;;  %v4721_v13 = vpop.f32.mrb[22].mxu0 }
 0x218   : > { %v4723_v35 = vpop.f32.mrb[23].mxu0 }
 0x219   : > { %v1294_v3 = vpop.permute.xlu1 %1293 }
 0x21b   : > { %v1438_v39 = vpop.permute.xlu0 %1437 }
 0x21d   : > { %v1288_v27 = vpop.permute.xlu1 %1287  ;;  %v4725_v8 = vpop.f32.mrb[24].mxu0 }
 0x21e   : > { %v4729_v26 = vpop.f32.mrb[25].mxu0  ;;  %v1546_v17 = vsel %vm5317_vm4, %v1506_v38, %v1288_v27  ;;  %vm5331_vm4 = vmmov %vm5301_vm0 }
 0x21f   : > { %v1472_v50 = vpop.permute.xlu0 %1471  ;;  %v4732_v60 = vpop.f32.mrb[26].mxu0  ;;  %vm5332_vm0 = vmmov %vm5306_vm1 }
 0x220   : > { %v4735_v55 = vpop.f32.mrb[27].mxu0  ;;  %vm5333_vm7 = vmmov %vm5331_vm4 }
 0x221   : > { %v1336_v59 = vpop.permute.xlu1 %1335 }
 0x222   : > { %v1586_v62 = vsel %vm1563_vm2, %v1546_v17, %v1336_v59 }
 0x223   : > { %2028 = vmatmul.mubr.bf16.gmra.mrb[44].mxu1 %v1586_v62  ;;  %v1392_v51 = vpop.permute.xlu0 %1391 }
 0x224   : > { %2035 = vmatprep.mubr.bf16.mxu1 %v4561_v12  ;;  %v1720_v12 = vsel %vm1563_vm2, %v4617_v37, %v1470_v14  ;;  %v1644_v37 = vsel %vm5320_vm9, %v4501_v42, %v1390_v9  ;;  %v1515_v9 = vsel %vm5322_vm11, %v4378_v52, %v1246_v57  ;;  %v1647_v33 = vsel %vm5323_vm15, %v4525_v56, %v1392_v51  ;;  %vm5334_vm9 = vmmov %vm5331_vm4 }
 0x225   : > { %v1342_v4 = vpop.permute.xlu1 %1341  ;;  %v4738_v43 = vpop.f32.mrb[28].mxu0  ;;  %v1681_v23 = vsel %vm5321_vm6, %v1644_v37, %v1438_v39  ;;  %v1552_v18 = vsel %vm5306_vm1, %v1515_v9, %v1294_v3  ;;  %vm5335_vm6 = vmmov %vm5332_vm0 }
 0x226   : > { %v4742_v29 = vpop.f32.mrb[29].mxu0  ;;  %v1723_v0 = vsel %vm1563_vm2, %v1681_v23, %v1472_v50  ;;  %v1595_v62 = vsel %vm1563_vm2, %v1552_v18, %v1342_v4  ;;  %vm5336_vm11 = vmmov %vm5332_vm0 }
 0x227   : > { %v1440_v31 = vpop.permute.xlu0 %1439  ;;  %v4745_v16 = vpop.f32.mrb[30].mxu0  ;;  %vm5337_vm1 = vmmov %vm5331_vm4 }
 0x228   : > { %v4748_v34 = vpop.f32.mrb[31].mxu0  ;;  %v1683_v50 = vsel %vm5324_vm13, %v1647_v33, %v1440_v31  ;;  %vm5338_vm15 = vmmov %vm5332_vm0 }
 0x229   : > { %v1248_v54 = vpop.permute.xlu1 %1247  ;;  %vm5339_vm13 = vmmov %vm5337_vm1 }
 0x22a   : > { %v1518_v56 = vsel %vm5325_vm10, %v4381_v44, %v1248_v54  ;;  %vm5340_vm10 = vmmov %vm5332_vm0 }
 0x22b   : > { %2036 = vmatmul.mubr.bf16.gmra.mrb[48].mxu1 %v1589_v22  ;;  %v1474_v2 = vpop.permute.xlu0 %1473 }
 0x22c   : > { %2043 = vmatprep.mubr.bf16.mxu1 %v1720_v12  ;;  %v1726_v52 = vsel %vm1563_vm2, %v1683_v50, %v1474_v2 }
 0x22d   : > { %v1296_v28 = vpop.permute.xlu1 %1295  ;;  %v4758_v47 = vpop.f32.mrb[32].mxu0 }
 0x22e   : > { %v4760_v40 = vpop.f32.mrb[33].mxu0  ;;  %v1554_v31 = vsel %vm5326_vm3, %v1518_v56, %v1296_v28  ;;  %vm5341_vm3 = vmmov %vm5337_vm1 }
 0x22f   : > { %v1394_v7 = vpop.permute.xlu0 %1393  ;;  %v4764_v24 = vpop.f32.mrb[34].mxu0 }
 0x230   : > { %v4769_v14 = vpop.f32.mrb[35].mxu0  ;;  %v1650_v4 = vsel %vm5327_vm8, %v4549_v20, %v1394_v7  ;;  %vm5342_vm8 = vmmov %vm5332_vm0 }
 0x231   : > { %v1344_v15 = vpop.permute.xlu1 %1343 }
 0x232   : > { %v1598_v6 = vsel %vm1563_vm2, %v1554_v31, %v1344_v15 }
 0x233   : > { %2044 = vmatmul.mubr.bf16.gmra.mrb[52].mxu1 %v1592_v19  ;;  %v1442_v27 = vpop.permute.xlu0 %1441 }
 0x234   : > { %2051 = vmatprep.mubr.bf16.mxu1 %v1723_v0  ;;  %v1685_v2 = vsel %vm5328_vm14, %v1650_v4, %v1442_v27  ;;  %vm5344_vm14 = vmmov %vm5337_vm1 }
 0x235   : > { %v1250_v21 = vpop.permute.xlu1 %1249  ;;  %v4772_v42 = vpop.f32.mrb[36].mxu0 }
 0x236   : > { %v4776_v39 = vpop.f32.mrb[37].mxu0  ;;  %v1521_v28 = vsel %vm5329_vm5, %v4391_v45, %v1250_v21  ;;  %vm5345_vm5 = vmmov %vm5337_vm1 }
 0x237   : > { %v1476_v38 = vpop.permute.xlu0 %1475  ;;  %v4781_v59 = vpop.f32.mrb[38].mxu0 }
 0x238   : > { %v4785_v32 = vpop.f32.mrb[39].mxu0  ;;  %v1729_v44 = vsel %vm1563_vm2, %v1685_v2, %v1476_v38 }
 0x239   : > { %v1298_v17 = vpop.permute.xlu1 %1297 }
 0x23a   : > { %v1556_v20 = vsel %vm5330_vm12, %v1521_v28, %v1298_v17  ;;  %vm5346_vm12 = vmmov %vm5337_vm1 }
 0x23b   : > { %2052 = vmatmul.mubr.bf16.gmra.mrb[56].mxu1 %v1595_v62  ;;  %v1396_v57 = vpop.permute.xlu0 %1395 }
 0x23c   : > { %2059 = vmatprep.mubr.bf16.mxu1 %v1726_v52  ;;  %v1653_v7 = vsel %vm5331_vm4, %v4579_v41, %v1396_v57  ;;  %vm5347_vm4 = vmmov %vm5337_vm1 }
 0x23d   : > { %v1346_v11 = vpop.permute.xlu1 %1345  ;;  %v4788_v10 = vpop.f32.mrb[40].mxu0 }
 0x23e   : > { %v4792_v51 = vpop.f32.mrb[41].mxu0  ;;  %v1601_v0 = vsel %vm1563_vm2, %v1556_v20, %v1346_v11 }
 0x23f   : > { %v1444_v3 = vpop.permute.xlu0 %1443  ;;  %v4797_v12 = vpop.f32.mrb[42].mxu0 }
 0x240   : > { %v4801_v58 = vpop.f32.mrb[43].mxu0  ;;  %v1687_v15 = vsel %vm5332_vm0, %v1653_v7, %v1444_v3  ;;  %vm5348_vm0 = vmmov %vm5337_vm1 }
 0x241   : > { %v1252_v22 = vpop.permute.xlu1 %1251 }
 0x242   : > { %v1524_v45 = vsel %vm5333_vm7, %v4394_v61, %v1252_v22  ;;  %vm5349_vm7 = vmmov %vm5348_vm0 }
 0x243   : > { %2060 = vmatmul.mubr.bf16.gmra.mrb[60].mxu1 %v1598_v6  ;;  %v1478_v54 = vpop.permute.xlu0 %1477 }
 0x244   : > { %2067 = vmatprep.mubr.bf16.mxu1 %v1729_v44  ;;  %v1732_v27 = vsel %vm1563_vm2, %v1687_v15, %v1478_v54 }
 0x245   : > { %v1300_v37 = vpop.permute.xlu1 %1299 }
 0x246   : > { %v1558_v41 = vsel %vm5335_vm6, %v1524_v45, %v1300_v37  ;;  %vm5351_vm6 = vmmov %vm5348_vm0 }
 0x247   : > { %v1480_v23 = vpop.permute.xlu0 %1479 }
 0x249   : > { %v1348_v19 = vpop.permute.xlu1 %1347 }
 0x24a   : > { %v1604_v50 = vsel %vm1563_vm2, %v1558_v41, %v1348_v19 }
 0x24b   : > { %2068 = vmatmul.mubr.bf16.gmra.mrb[64].mxu1 %v1601_v0  ;;  %v1398_v9 = vpop.permute.xlu0 %1397 }
 0x24c   : > { %2075 = vmatprep.mubr.bf16.mxu1 %v1732_v27  ;;  %v1656_v21 = vsel %vm5334_vm9, %v4614_v30, %v1398_v9  ;;  %vm5350_vm9 = vmmov %vm5348_vm0 }
 0x24d   : > { %v1254_v38 = vpop.permute.xlu1 %1253 }
 0x24e   : > { %v1527_v61 = vsel %vm5337_vm1, %v4405_v48, %v1254_v38 }
 0x24f   : > { %v1446_v18 = vpop.permute.xlu0 %1445 }
 0x250   : > { %v1689_v33 = vsel %vm5336_vm11, %v1656_v21, %v1446_v18  ;;  %vm5352_vm11 = vmmov %vm5348_vm0 }
 0x251   : > { %v1302_v17 = vpop.permute.xlu1 %1301  ;;  %v1735_v62 = vsel %vm1563_vm2, %v1689_v33, %v1480_v23 }
 0x252   : > { %v1560_v30 = vsel %vm5338_vm15, %v1527_v61, %v1302_v17  ;;  %vm5354_vm15 = vmmov %vm5348_vm0 }
 0x253   : > { %2076 = vmatmul.mubr.bf16.gmra.mrb[68].mxu1 %v1604_v50  ;;  %v1400_v52 = vpop.permute.xlu0 %1399 }
 0x254   : > { %2083 = vmatprep.mubr.bf16.mxu1 %v1735_v62  ;;  %v1659_v31 = vsel %vm5339_vm13, %v4626_v25, %v1400_v52  ;;  %v4835_v25 = vld [vmem:[%s5117_s4] ss:$0 sm:$0xff]  ;;  %vm5355_vm13 = vmmov %vm5348_vm0 }
 0x255   : > { %v1350_v57 = vpop.permute.xlu1 %1349 }
 0x256   : > { %v1607_v3 = vsel %vm1563_vm2, %v1560_v30, %v1350_v57 }
 0x257   : > { %v1448_v11 = vpop.permute.xlu0 %1447 }
 0x258   : > { %v1691_v4 = vsel %vm5340_vm10, %v1659_v31, %v1448_v11  ;;  %vm5356_vm10 = vmmov %vm5348_vm0 }
 0x259   : > { %v1256_v56 = vpop.permute.xlu1 %1255 }
 0x25a   : > { %v1530_v48 = vsel %vm5341_vm3, %v4408_v36, %v1256_v56  ;;  %vm5357_vm3 = vmmov %vm5348_vm0 }
 0x25b   : > { %2084 = vmatmul.mubr.bf16.gmra.mrb[72].mxu1 %v1607_v3  ;;  %v1482_v22 = vpop.permute.xlu0 %1481 }
 0x25c   : > { %v1738_v6 = vsel %vm1563_vm2, %v1691_v4, %v1482_v22 }
 0x25d   : > { %v1304_v2 = vpop.permute.xlu1 %1303  ;;  %2091 = vmatprep.mubr.bf16.mxu1 %v1738_v6 }
 0x25e   : > { %v1562_v44 = vsel %vm5342_vm8, %v1530_v48, %v1304_v2  ;;  %vm5358_vm8 = vmmov %vm5348_vm0 }
 0x261   : > { %v1352_v54 = vpop.permute.xlu1 %1351 }
 0x262   : > { %v1610_v37 = vsel %vm1563_vm2, %v1562_v44, %v1352_v54  ;;  %vm5343_vm2 = vmmov %vm5337_vm1 }
 0x263   : > { %2092 = vmatmul.mubr.bf16.gmra.mrb[76].mxu1 %v1610_v37  ;;  %vm5353_vm1 = vmmov %vm5348_vm0 }
 0x28d   : > { %v2883_v28 = vpop.f32.mrb[16].mxu1 }
 0x28e   : > { %v2884_v23 = vpop.f32.mrb[17].mxu1 }
 0x28f   : > { %v2885_v20 = vadd.f32 %v2884_v23, %v2883_v28  ;;  %v2886_v7 = vpop.f32.mrb[18].mxu1 }
 0x290   : > { %v2887_v19 = vpop.f32.mrb[19].mxu1 }
 0x291   : > { %v1974_v15 = vadd.f32 %v2885_v20, %v4835_v25  ;;  %v2888_v0 = vadd.f32 %v2887_v19, %v2886_v7 }
 0x293   : > { %v2135_v36 = vadd.f32 %v4702_v49, %v1974_v15  ;;  %v1977_v27 = vadd.f32 %v2888_v0, %v4835_v25 }
 0x295   : > { %v2138_v9 = vadd.f32 %v4712_v63, %v1977_v27  ;;  %v2261_v38 = vmax.f32 %v2135_v36, 0.0 }
 0x297   : > { %v2262_v45 = vmax.f32 %v2138_v9, 0.0 }
 0x299   : > { %v2293_v21 = vpack.c.bf16 %v2262_v45, %v2261_v38 }
 0x29b   : > { %3095 = vmatprep.mubr.msk.bf16.mxu0 %vm5343_vm2, %v2293_v21  ;;  %vm5359_vm2 = vcmask 523264  }
 0x2a1   : > { %v2889_v18 = vpop.f32.mrb[20].mxu1 }
 0x2a2   : > { %v2890_v41 = vpop.f32.mrb[21].mxu1 }
 0x2a3   : > { %v2891_v33 = vadd.f32 %v2890_v41, %v2889_v18  ;;  %v2892_v17 = vpop.f32.mrb[22].mxu1 }
 0x2a4   : > { %v2893_v50 = vpop.f32.mrb[23].mxu1 }
 0x2a5   : > { %v1982_v62 = vadd.f32 %v2891_v33, %v4835_v25  ;;  %v2894_v52 = vadd.f32 %v2893_v50, %v2892_v17 }
 0x2a7   : > { %v2143_v57 = vadd.f32 %v4696_v53, %v1982_v62  ;;  %v1985_v49 = vadd.f32 %v2894_v52, %v4835_v25 }
 0x2a9   : > { %v2146_v61 = vadd.f32 %v4708_v46, %v1985_v49  ;;  %v2263_v63 = vmax.f32 %v2143_v57, 0.0 }
 0x2ab   : > { %v2264_v11 = vmax.f32 %v2146_v61, 0.0 }
 0x2ad   : > { %v2294_v30 = vpack.c.bf16 %v2264_v11, %v2263_v63 }
 0x2ae   : > { %v2895_v56 = vpop.f32.mrb[24].mxu1 }
 0x2af   : > { %v2896_v3 = vpop.f32.mrb[25].mxu1  ;;  %3096 = vmatmul.mubr.msk.bf16.vlgmr.msra.gmra.mrb[48].mxu0 %vm5344_vm14, %v2294_v30  ;;  %v4850_v44 = vpop.f32.mrb[44].mxu0  ;;  %vm5360_vm14 = vmmov %vm5359_vm2 }
 0x2b0   : > { %v2897_v31 = vadd.f32 %v2896_v3, %v2895_v56  ;;  %v2898_v4 = vpop.f32.mrb[26].mxu1  ;;  %v4852_v46 = vpop.f32.mrb[45].mxu0 }
 0x2b1   : > { %v2899_v22 = vpop.f32.mrb[27].mxu1  ;;  %v4855_v37 = vpop.f32.mrb[46].mxu0 }
 0x2b2   : > { %v1990_v2 = vadd.f32 %v2897_v31, %v4835_v25  ;;  %v2900_v6 = vadd.f32 %v2899_v22, %v2898_v4  ;;  %v4857_v28 = vpop.f32.mrb[47].mxu0 }
 0x2b4   : > { %v2151_v48 = vadd.f32 %v4719_v1, %v1990_v2  ;;  %v1993_v53 = vadd.f32 %v2900_v6, %v4835_v25 }
 0x2b6   : > { %v2154_v54 = vadd.f32 %v4723_v35, %v1993_v53  ;;  %v2265_v23 = vmax.f32 %v2151_v48, 0.0 }
 0x2b8   : > { %v2266_v20 = vmax.f32 %v2154_v54, 0.0 }
 0x2ba   : > { %v2295_v7 = vpack.c.bf16 %v2266_v20, %v2265_v23 }
 0x2bc   : > { %3099 = vmatprep.mubr.msk.bf16.mxu0 %vm5345_vm5, %v2295_v7  ;;  %vm5361_vm5 = vmmov %vm5359_vm2 }
 0x2bd   : > { %v2901_v19 = vpop.f32.mrb[28].mxu1 }
 0x2be   : > { %v2902_v15 = vpop.f32.mrb[29].mxu1 }
 0x2bf   : > { %v2903_v1 = vadd.f32 %v2902_v15, %v2901_v19  ;;  %v2904_v0 = vpop.f32.mrb[30].mxu1 }
 0x2c0   : > { %v2905_v36 = vpop.f32.mrb[31].mxu1 }
 0x2c1   : > { %v1998_v27 = vadd.f32 %v2903_v1, %v4835_v25  ;;  %v2906_v9 = vadd.f32 %v2905_v36, %v2904_v0 }
 0x2c3   : > { %v2159_v38 = vadd.f32 %v4717_v5, %v1998_v27  ;;  %v2001_v35 = vadd.f32 %v2906_v9, %v4835_v25 }
 0x2c5   : > { %v2162_v45 = vadd.f32 %v4721_v13, %v2001_v35  ;;  %v2267_v18 = vmax.f32 %v2159_v38, 0.0 }
 0x2c6   : > { %v2907_v21 = vpop.f32.mrb[32].mxu1 }
 0x2c7   : > { %v2268_v41 = vmax.f32 %v2162_v45, 0.0  ;;  %v2908_v33 = vpop.f32.mrb[33].mxu1 }
 0x2c8   : > { %v2909_v17 = vadd.f32 %v2908_v33, %v2907_v21  ;;  %v2910_v50 = vpop.f32.mrb[34].mxu1 }
 0x2c9   : > { %v2296_v62 = vpack.c.bf16 %v2268_v41, %v2267_v18  ;;  %v2911_v52 = vpop.f32.mrb[35].mxu1 }
 0x2ca   : > { %v2006_v57 = vadd.f32 %v2909_v17, %v4835_v25  ;;  %v2912_v49 = vadd.f32 %v2911_v52, %v2910_v50 }
 0x2cb   : > { %3100 = vmatmul.mubr.msk.bf16.gmra.mrb[52].mxu0 %vm5346_vm12, %v2296_v62  ;;  %vm5362_vm12 = vmmov %vm5359_vm2 }
 0x2cc   : > { %v2167_v61 = vadd.f32 %v4729_v26, %v2006_v57  ;;  %v2009_v5 = vadd.f32 %v2912_v49, %v4835_v25 }
 0x2ce   : > { %v2170_v63 = vadd.f32 %v4735_v55, %v2009_v5  ;;  %v2269_v13 = vmax.f32 %v2167_v61, 0.0 }
 0x2d0   : > { %v2270_v11 = vmax.f32 %v2170_v63, 0.0 }
 0x2d2   : > { %v2297_v30 = vpack.c.bf16 %v2270_v11, %v2269_v13 }
 0x2d4   : > { %3103 = vmatprep.mubr.msk.bf16.mxu0 %vm5347_vm4, %v2297_v30  ;;  %vm5363_vm4 = vmmov %vm5359_vm2 }
 0x2d5   : > { %v2913_v56 = vpop.f32.mrb[36].mxu1 }
 0x2d6   : > { %v2914_v3 = vpop.f32.mrb[37].mxu1 }
 0x2d7   : > { %v2915_v31 = vadd.f32 %v2914_v3, %v2913_v56  ;;  %v2916_v4 = vpop.f32.mrb[38].mxu1 }
 0x2d8   : > { %v2917_v22 = vpop.f32.mrb[39].mxu1 }
 0x2d9   : > { %v2014_v2 = vadd.f32 %v2915_v31, %v4835_v25  ;;  %v2918_v6 = vadd.f32 %v2917_v22, %v2916_v4 }
 0x2db   : > { %v2175_v48 = vadd.f32 %v4725_v8, %v2014_v2  ;;  %v2017_v26 = vadd.f32 %v2918_v6, %v4835_v25 }
 0x2dd   : > { %v2178_v53 = vadd.f32 %v4732_v60, %v2017_v26  ;;  %v2271_v55 = vmax.f32 %v2175_v48, 0.0 }
 0x2df   : > { %v2272_v54 = vmax.f32 %v2178_v53, 0.0 }
 0x2e1   : > { %v2298_v23 = vpack.c.bf16 %v2272_v54, %v2271_v55 }
 0x2e3   : > { %3104 = vmatmul.mubr.msk.bf16.gmra.mrb[56].mxu0 %vm5348_vm0, %v2298_v23  ;;  %vm5364_vm0 = vmmov %vm5359_vm2 }
 0x2e6   : > { %v2919_v20 = vpop.f32.mrb[40].mxu1 }
 0x2e7   : > { %v2920_v7 = vpop.f32.mrb[41].mxu1 }
 0x2e8   : > { %v2921_v19 = vadd.f32 %v2920_v7, %v2919_v20  ;;  %v2922_v15 = vpop.f32.mrb[42].mxu1 }
 0x2e9   : > { %v2923_v1 = vpop.f32.mrb[43].mxu1 }
 0x2ea   : > { %v2022_v0 = vadd.f32 %v2921_v19, %v4835_v25  ;;  %v2924_v36 = vadd.f32 %v2923_v1, %v2922_v15 }
 0x2ec   : > { %v2183_v27 = vadd.f32 %v4742_v29, %v2022_v0  ;;  %v2025_v8 = vadd.f32 %v2924_v36, %v4835_v25 }
 0x2ee   : > { %v2186_v9 = vadd.f32 %v4748_v34, %v2025_v8  ;;  %v2273_v60 = vmax.f32 %v2183_v27, 0.0 }
 0x2f0   : > { %v2274_v38 = vmax.f32 %v2186_v9, 0.0 }
 0x2f2   : > { %v2299_v35 = vpack.c.bf16 %v2274_v38, %v2273_v60 }
 0x2f4   : > { %3107 = vmatprep.mubr.msk.bf16.mxu0 %vm5349_vm7, %v2299_v35  ;;  %vm5365_vm7 = vmmov %vm5364_vm0 }
 0x2f6   : > { %v2925_v45 = vpop.f32.mrb[44].mxu1 }
 0x2f7   : > { %v2926_v21 = vpop.f32.mrb[45].mxu1 }
 0x2f8   : > { %v2927_v18 = vadd.f32 %v2926_v21, %v2925_v45  ;;  %v2928_v41 = vpop.f32.mrb[46].mxu1 }
 0x2f9   : > { %v2929_v33 = vpop.f32.mrb[47].mxu1 }
 0x2fa   : > { %v2030_v17 = vadd.f32 %v2927_v18, %v4835_v25  ;;  %v2930_v50 = vadd.f32 %v2929_v33, %v2928_v41 }
 0x2fc   : > { %v2191_v62 = vadd.f32 %v4738_v43, %v2030_v17  ;;  %v2033_v29 = vadd.f32 %v2930_v50, %v4835_v25 }
 0x2fe   : > { %v2194_v52 = vadd.f32 %v4745_v16, %v2033_v29  ;;  %v2931_v34 = vpop.f32.mrb[48].mxu1  ;;  %v2275_v49 = vmax.f32 %v2191_v62, 0.0 }
 0x2ff   : > { %v2932_v57 = vpop.f32.mrb[49].mxu1 }
 0x300   : > { %v2276_v61 = vmax.f32 %v2194_v52, 0.0  ;;  %v2933_v5 = vadd.f32 %v2932_v57, %v2931_v34  ;;  %v2934_v63 = vpop.f32.mrb[50].mxu1 }
 0x301   : > { %v2935_v13 = vpop.f32.mrb[51].mxu1 }
 0x302   : > { %v2300_v11 = vpack.c.bf16 %v2276_v61, %v2275_v49  ;;  %v2038_v30 = vadd.f32 %v2933_v5, %v4835_v25  ;;  %v2936_v56 = vadd.f32 %v2935_v13, %v2934_v63 }
 0x304   : > { %v2199_v3 = vadd.f32 %v4760_v40, %v2038_v30  ;;  %v2041_v31 = vadd.f32 %v2936_v56, %v4835_v25  ;;  %3108 = vmatmul.mubr.msk.bf16.gmra.mrb[60].mxu0 %vm5350_vm9, %v2300_v11  ;;  %vm5366_vm9 = vmmov %vm5364_vm0 }
 0x306   : > { %v2202_v43 = vadd.f32 %v4769_v14, %v2041_v31  ;;  %v2937_v16 = vpop.f32.mrb[52].mxu1  ;;  %v2277_v22 = vmax.f32 %v2199_v3, 0.0 }
 0x307   : > { %v2938_v4 = vpop.f32.mrb[53].mxu1 }
 0x308   : > { %v2278_v2 = vmax.f32 %v2202_v43, 0.0  ;;  %v2939_v6 = vadd.f32 %v2938_v4, %v2937_v16  ;;  %v2940_v48 = vpop.f32.mrb[54].mxu1 }
 0x309   : > { %v2941_v26 = vpop.f32.mrb[55].mxu1 }
 0x30a   : > { %v2301_v53 = vpack.c.bf16 %v2278_v2, %v2277_v22  ;;  %v2046_v55 = vadd.f32 %v2939_v6, %v4835_v25  ;;  %v2942_v54 = vadd.f32 %v2941_v26, %v2940_v48 }
 0x30c   : > { %v2207_v23 = vadd.f32 %v4758_v47, %v2046_v55  ;;  %v2049_v40 = vadd.f32 %v2942_v54, %v4835_v25  ;;  %3111 = vmatprep.mubr.msk.bf16.mxu0 %vm5351_vm6, %v2301_v53  ;;  %vm5367_vm6 = vmmov %vm5364_vm0 }
 0x30e   : > { %v2210_v20 = vadd.f32 %v4764_v24, %v2049_v40  ;;  %v2943_v14 = vpop.f32.mrb[56].mxu1  ;;  %v2279_v19 = vmax.f32 %v2207_v23, 0.0 }
 0x30f   : > { %v2944_v7 = vpop.f32.mrb[57].mxu1 }
 0x310   : > { %v2280_v15 = vmax.f32 %v2210_v20, 0.0  ;;  %v2945_v1 = vadd.f32 %v2944_v7, %v2943_v14  ;;  %v2946_v0 = vpop.f32.mrb[58].mxu1 }
 0x311   : > { %v2947_v36 = vpop.f32.mrb[59].mxu1 }
 0x312   : > { %v2302_v27 = vpack.c.bf16 %v2280_v15, %v2279_v19  ;;  %v2054_v8 = vadd.f32 %v2945_v1, %v4835_v25  ;;  %v2948_v9 = vadd.f32 %v2947_v36, %v2946_v0 }
 0x314   : > { %v2215_v60 = vadd.f32 %v4776_v39, %v2054_v8  ;;  %v2057_v47 = vadd.f32 %v2948_v9, %v4835_v25  ;;  %3112 = vmatmul.mubr.msk.bf16.gmra.mrb[64].mxu0 %vm5352_vm11, %v2302_v27  ;;  %vm5368_vm11 = vmmov %vm5364_vm0 }
 0x316   : > { %v2218_v38 = vadd.f32 %v4785_v32, %v2057_v47  ;;  %v2949_v24 = vpop.f32.mrb[60].mxu1  ;;  %v2281_v45 = vmax.f32 %v2215_v60, 0.0 }
 0x317   : > { %v2950_v35 = vpop.f32.mrb[61].mxu1 }
 0x318   : > { %v2282_v21 = vmax.f32 %v2218_v38, 0.0  ;;  %v2951_v18 = vadd.f32 %v2950_v35, %v2949_v24  ;;  %v2952_v41 = vpop.f32.mrb[62].mxu1 }
 0x319   : > { %v2953_v33 = vpop.f32.mrb[63].mxu1 }
 0x31a   : > { %v2303_v17 = vpack.c.bf16 %v2282_v21, %v2281_v45  ;;  %v2062_v50 = vadd.f32 %v2951_v18, %v4835_v25  ;;  %v2954_v62 = vadd.f32 %v2953_v33, %v2952_v41 }
 0x31c   : > { %v2223_v29 = vadd.f32 %v4772_v42, %v2062_v50  ;;  %v2065_v39 = vadd.f32 %v2954_v62, %v4835_v25  ;;  %3115 = vmatprep.mubr.msk.bf16.mxu0 %vm5353_vm1, %v2303_v17  ;;  %v4928_v17 = vld [vmem:[%s5119_s6] ss:$0 sm:$0xff]  ;;  %vm5369_vm1 = vmmov %vm5364_vm0 }
 0x31e   : > { %v2226_v52 = vadd.f32 %v4781_v59, %v2065_v39  ;;  %v2955_v32 = vpop.f32.mrb[64].mxu1  ;;  %v2283_v57 = vmax.f32 %v2223_v29, 0.0  ;;  %v2541_v29 = vld [vmem:[%s3471_s15] sm:$0xff] }
 0x31f   : > { %v2956_v34 = vpop.f32.mrb[65].mxu1 }
 0x320   : > { %v2284_v49 = vmax.f32 %v2226_v52, 0.0  ;;  %v2957_v61 = vadd.f32 %v2956_v34, %v2955_v32  ;;  %v2958_v5 = vpop.f32.mrb[66].mxu1  ;;  %v2544_v52 = vld [vmem:[%s3471_s15 + $0x18] sm:$0xff] }
 0x321   : > { %v2959_v63 = vpop.f32.mrb[67].mxu1 }
 0x322   : > { %v2304_v13 = vpack.c.bf16 %v2284_v49, %v2283_v57  ;;  %v2070_v11 = vadd.f32 %v2957_v61, %v4835_v25  ;;  %v2960_v30 = vadd.f32 %v2959_v63, %v2958_v5  ;;  %v2542_v49 = vld [vmem:[%s3471_s15 + $0x8] sm:$0xff] }
 0x324   : > { %v2231_v56 = vadd.f32 %v4792_v51, %v2070_v11  ;;  %v2073_v42 = vadd.f32 %v2960_v30, %v4835_v25  ;;  %3116 = vmatmul.mubr.msk.bf16.gmra.mrb[68].mxu0 %vm5354_vm15, %v2304_v13  ;;  %vm5370_vm15 = vmmov %vm5364_vm0 }
 0x326   : > { %v2234_v3 = vadd.f32 %v4801_v58, %v2073_v42  ;;  %v2961_v59 = vpop.f32.mrb[68].mxu1  ;;  %v2285_v43 = vmax.f32 %v2231_v56, 0.0 }
 0x327   : > { %v2962_v31 = vpop.f32.mrb[69].mxu1 }
 0x328   : > { %v2286_v16 = vmax.f32 %v2234_v3, 0.0  ;;  %v2963_v4 = vadd.f32 %v2962_v31, %v2961_v59  ;;  %v2964_v22 = vpop.f32.mrb[70].mxu1  ;;  %v2547_v59 = vld [vmem:[%s3471_s15 + $0x30] sm:$0xff] }
 0x329   : > { %v2965_v2 = vpop.f32.mrb[71].mxu1 }
 0x32a   : > { %v2305_v6 = vpack.c.bf16 %v2286_v16, %v2285_v43  ;;  %v2078_v48 = vadd.f32 %v2963_v4, %v4835_v25  ;;  %v2966_v26 = vadd.f32 %v2965_v2, %v2964_v22  ;;  %v2545_v16 = vld [vmem:[%s3471_s15 + $0x20] sm:$0xff]  ;;  %v2548_v2 = vld [vmem:[%s3471_s15 + $0x38] sm:$0xff] }
 0x32c   : > { %v2239_v53 = vadd.f32 %v4788_v10, %v2078_v48  ;;  %v2081_v51 = vadd.f32 %v2966_v26, %v4835_v25  ;;  %3119 = vmatprep.mubr.msk.bf16.mxu0 %vm5355_vm13, %v2305_v6  ;;  %vm5371_vm13 = vmmov %vm5364_vm0 }
 0x32e   : > { %v2242_v55 = vadd.f32 %v4797_v12, %v2081_v51  ;;  %v2967_v58 = vpop.f32.mrb[72].mxu1  ;;  %v2287_v23 = vmax.f32 %v2239_v53, 0.0  ;;  %v2546_v53 = vld [vmem:[%s3471_s15 + $0x28] sm:$0xff] }
 0x32f   : > { %v2968_v54 = vpop.f32.mrb[73].mxu1 }
 0x330   : > { %v2288_v40 = vmax.f32 %v2242_v55, 0.0  ;;  %v2969_v20 = vadd.f32 %v2968_v54, %v2967_v58  ;;  %v2970_v14 = vpop.f32.mrb[74].mxu1 }
 0x331   : > { %v2971_v7 = vpop.f32.mrb[75].mxu1 }
 0x332   : > { %v2306_v19 = vpack.c.bf16 %v2288_v40, %v2287_v23  ;;  %v2972_v15 = vadd.f32 %v2971_v7, %v2970_v14  ;;  %v2086_v1 = vadd.f32 %v2969_v20, %v4835_v25 }
 0x334   : > { %v2247_v0 = vadd.f32 %v4852_v46, %v2086_v1  ;;  %3120 = vmatmul.mubr.msk.bf16.gmra.mrb[72].mxu0 %vm5356_vm10, %v2306_v19  ;;  %v2089_v10 = vadd.f32 %v2972_v15, %v4835_v25  ;;  %v2551_v19 = vld [vmem:[%s3471_s15 + $0x50] sm:$0xff]  ;;  %vm5372_vm10 = vmmov %vm5364_vm0 }
 0x336   : > { %v2250_v36 = vadd.f32 %v4857_v28, %v2089_v10  ;;  %v2973_v12 = vpop.f32.mrb[76].mxu1  ;;  %v2289_v8 = vmax.f32 %v2247_v0, 0.0  ;;  %v2549_v0 = vld [vmem:[%s3471_s15 + $0x40] sm:$0xff] }
 0x337   : > { %v2974_v27 = vpop.f32.mrb[77].mxu1 }
 0x338   : > { %v2290_v9 = vmax.f32 %v2250_v36, 0.0  ;;  %v2975_v60 = vadd.f32 %v2974_v27, %v2973_v12  ;;  %v2976_v47 = vpop.f32.mrb[78].mxu1  ;;  %v2552_v12 = vld [vmem:[%s3471_s15 + $0x58] sm:$0xff] }
 0x339   : > { %v2977_v38 = vpop.f32.mrb[79].mxu1 }
 0x33a   : > { %v2307_v24 = vpack.c.bf16 %v2290_v9, %v2289_v8  ;;  %v2094_v35 = vadd.f32 %v2975_v60, %v4835_v25  ;;  %v2978_v45 = vadd.f32 %v2977_v38, %v2976_v47  ;;  %v2550_v60 = vld [vmem:[%s3471_s15 + $0x48] sm:$0xff] }
 0x33c   : > { %v2255_v46 = vadd.f32 %v4850_v44, %v2094_v35  ;;  %v2097_v21 = vadd.f32 %v2978_v45, %v4835_v25  ;;  %3123 = vmatprep.mubr.msk.bf16.mxu0 %vm5357_vm3, %v2307_v24  ;;  %v2543_v44 = vld [vmem:[%s3471_s15 + $0x10] sm:$0xff]  ;;  %vm5373_vm3 = vmmov %vm5364_vm0 }
 0x33e   : > { %v2258_v28 = vadd.f32 %v4855_v37, %v2097_v21  ;;  %v2291_v18 = vmax.f32 %v2255_v46, 0.0 }
 0x340   : > { %v2292_v41 = vmax.f32 %v2258_v28, 0.0 }
 0x342   : > { %v2308_v33 = vpack.c.bf16 %v2292_v41, %v2291_v18  ;;  %v2555_v41 = vld [vmem:[%s3471_s15 + $0x70] sm:$0xff] }
 0x344   : > { %3124 = vmatmul.mubr.msk.bf16.gmra.mrb[76].mxu0 %vm5358_vm8, %v2308_v33  ;;  %vm5374_vm8 = vmmov %vm5364_vm0 }
 0x382   : > { %v3097_v50 = vpop.f32.mrb[48].mxu0 }
 0x383   : > { %v2423_v62 = vadd.f32 %v3097_v50, %v4928_v17  ;;  %v2414_v25 = vpop.f32.mrb[49].mxu0 }
 0x384   : > { %v2415_v37 = vadd.f32 %v4928_v17, %v2414_v25  ;;  %v3098_v39 = vpop.f32.mrb[50].mxu0 }
 0x385   : > { %v2575_v32 = vadd.f32 %v2543_v44, %v2423_v62  ;;  %v2426_v34 = vadd.f32 %v3098_v39, %v4928_v17  ;;  %v2417_v57 = vpop.f32.mrb[51].mxu0  ;;  %v2553_v44 = vld [vmem:[%s3471_s15 + $0x60] sm:$0xff] }
 0x386   : > { %v2573_v61 = vadd.f32 %v2541_v29, %v2415_v37  ;;  %v2418_v5 = vadd.f32 %v4928_v17, %v2417_v57  ;;  %v2556_v29 = vld [vmem:[%s3471_s15 + $0x78] sm:$0xff] }
 0x387   : > { %v2607_v63 = vmax.f32 %v2575_v32, 0.0  ;;  %v2576_v13 = vadd.f32 %v2544_v52, %v2426_v34  ;;  %v2554_v32 = vld [vmem:[%s3471_s15 + $0x68] sm:$0xff] }
 0x388   : > { %v2605_v11 = vmax.f32 %v2573_v61, 0.0  ;;  %v2574_v30 = vadd.f32 %v2542_v49, %v2418_v5 }
 0x389   : > { %2639 = vst.msk [vmem:[%s4940_s9 + $0x10] sm:$0xff] %vm5359_vm2, %v2607_v63  ;;  %v2608_v56 = vmax.f32 %v2576_v13, 0.0  ;;  %vm5375_vm2 = vmmov %vm5364_vm0 }
 0x38a   : > { %2637 = vst.msk [vmem:[%s4940_s9] sm:$0xff] %vm5360_vm14, %v2605_v11  ;;  %v2606_v42 = vmax.f32 %v2574_v30, 0.0  ;;  %vm5376_vm14 = vmmov %vm5364_vm0 }
 0x38b   : > { %2640 = vst.msk [vmem:[%s4940_s9 + $0x18] sm:$0xff] %vm5361_vm5, %v2608_v56  ;;  %v2559_v56 = vld [vmem:[%s3471_s15 + $0x90] sm:$0xff]  ;;  %vm5377_vm5 = vmmov %vm5364_vm0 }
 0x38c   : > { %2638 = vst.msk [vmem:[%s4940_s9 + $0x8] sm:$0xff] %vm5362_vm12, %v2606_v42  ;;  %vm5378_vm12 = vmmov %vm5364_vm0 }
 0x39e   : > { %v3101_v3 = vpop.f32.mrb[52].mxu0 }
 0x39f   : > { %v2439_v31 = vadd.f32 %v3101_v3, %v4928_v17  ;;  %v2430_v43 = vpop.f32.mrb[53].mxu0 }
 0x3a0   : > { %v2431_v4 = vadd.f32 %v4928_v17, %v2430_v43  ;;  %v3102_v22 = vpop.f32.mrb[54].mxu0 }
 0x3a1   : > { %v2579_v6 = vadd.f32 %v2547_v59, %v2439_v31  ;;  %v2442_v48 = vadd.f32 %v3102_v22, %v4928_v17  ;;  %v2433_v26 = vpop.f32.mrb[55].mxu0  ;;  %v2557_v59 = vld [vmem:[%s3471_s15 + $0x80] sm:$0xff] }
 0x3a2   : > { %v2577_v51 = vadd.f32 %v2545_v16, %v2431_v4  ;;  %v2434_v55 = vadd.f32 %v4928_v17, %v2433_v26  ;;  %v2560_v16 = vld [vmem:[%s3471_s15 + $0x98] sm:$0xff] }
 0x3a3   : > { %v2611_v58 = vmax.f32 %v2579_v6, 0.0  ;;  %v2580_v54 = vadd.f32 %v2548_v2, %v2442_v48  ;;  %v2558_v6 = vld [vmem:[%s3471_s15 + $0x88] sm:$0xff] }
 0x3a4   : > { %v2609_v23 = vmax.f32 %v2577_v51, 0.0  ;;  %v2578_v40 = vadd.f32 %v2546_v53, %v2434_v55 }
 0x3a5   : > { %2643 = vst.msk [vmem:[%s4940_s9 + $0x30] sm:$0xff] %vm5363_vm4, %v2611_v58  ;;  %v2612_v20 = vmax.f32 %v2580_v54, 0.0  ;;  %vm5379_vm4 = vmmov %vm5364_vm0 }
 0x3a6   : > { %2641 = vst.msk [vmem:[%s4940_s9 + $0x20] sm:$0xff] %vm5364_vm0, %v2609_v23  ;;  %v2610_v14 = vmax.f32 %v2578_v40, 0.0 }
 0x3a7   : > { %2644 = vst.msk [vmem:[%s4940_s9 + $0x38] sm:$0xff] %vm5365_vm7, %v2612_v20  ;;  %v2563_v20 = vld [vmem:[%s3471_s15 + $0xb0] sm:$0xff]  ;;  %vm5380_vm7 = vmmov %vm5364_vm0 }
 0x3a8   : > { %2642 = vst.msk [vmem:[%s4940_s9 + $0x28] sm:$0xff] %vm5366_vm9, %v2610_v14  ;;  %vm5381_vm9 = vmmov %vm5364_vm0 }
 0x3b6   : > { %v3105_v7 = vpop.f32.mrb[56].mxu0 }
 0x3b7   : > { %v2455_v15 = vadd.f32 %v3105_v7, %v4928_v17  ;;  %v2446_v1 = vpop.f32.mrb[57].mxu0 }
 0x3b8   : > { %v2447_v10 = vadd.f32 %v4928_v17, %v2446_v1  ;;  %v3106_v36 = vpop.f32.mrb[58].mxu0 }
 0x3b9   : > { %v2583_v27 = vadd.f32 %v2551_v19, %v2455_v15  ;;  %v2458_v8 = vadd.f32 %v3106_v36, %v4928_v17  ;;  %v2449_v9 = vpop.f32.mrb[59].mxu0  ;;  %v2561_v19 = vld [vmem:[%s3471_s15 + $0xa0] sm:$0xff] }
 0x3ba   : > { %v2581_v47 = vadd.f32 %v2549_v0, %v2447_v10  ;;  %v2450_v38 = vadd.f32 %v4928_v17, %v2449_v9  ;;  %v2564_v0 = vld [vmem:[%s3471_s15 + $0xb8] sm:$0xff] }
 0x3bb   : > { %v2615_v24 = vmax.f32 %v2583_v27, 0.0  ;;  %v2584_v35 = vadd.f32 %v2552_v12, %v2458_v8  ;;  %v2562_v27 = vld [vmem:[%s3471_s15 + $0xa8] sm:$0xff] }
 0x3bc   : > { %v2613_v45 = vmax.f32 %v2581_v47, 0.0  ;;  %v2582_v46 = vadd.f32 %v2550_v60, %v2450_v38 }
 0x3bd   : > { %2647 = vst.msk [vmem:[%s4940_s9 + $0x50] sm:$0xff] %vm5367_vm6, %v2615_v24  ;;  %v2616_v21 = vmax.f32 %v2584_v35, 0.0  ;;  %vm5382_vm6 = vmmov %vm5364_vm0 }
 0x3be   : > { %2645 = vst.msk [vmem:[%s4940_s9 + $0x40] sm:$0xff] %vm5368_vm11, %v2613_v45  ;;  %v2614_v28 = vmax.f32 %v2582_v46, 0.0  ;;  %vm5383_vm11 = vmmov %vm5364_vm0 }
 0x3bf   : > { %2648 = vst.msk [vmem:[%s4940_s9 + $0x58] sm:$0xff] %vm5369_vm1, %v2616_v21  ;;  %v2567_v21 = vld [vmem:[%s3471_s15 + $0xd0] sm:$0xff]  ;;  %vm5384_vm1 = vmmov %vm5364_vm0 }
 0x3c0   : > { %2646 = vst.msk [vmem:[%s4940_s9 + $0x48] sm:$0xff] %vm5370_vm15, %v2614_v28  ;;  %vm5385_vm15 = vmmov %vm5364_vm0 }
 0x3d7   : > { %v3109_v18 = vpop.f32.mrb[60].mxu0 }
 0x3d8   : > { %v2471_v33 = vadd.f32 %v3109_v18, %v4928_v17  ;;  %v2462_v50 = vpop.f32.mrb[61].mxu0 }
 0x3d9   : > { %v2463_v62 = vadd.f32 %v4928_v17, %v2462_v50  ;;  %v3110_v25 = vpop.f32.mrb[62].mxu0 }
 0x3da   : > { %v2587_v37 = vadd.f32 %v2555_v41, %v2471_v33  ;;  %v2474_v39 = vadd.f32 %v3110_v25, %v4928_v17  ;;  %v2465_v52 = vpop.f32.mrb[63].mxu0  ;;  %v2565_v41 = vld [vmem:[%s3471_s15 + $0xc0] sm:$0xff] }
 0x3db   : > { %v2585_v34 = vadd.f32 %v2553_v44, %v2463_v62  ;;  %v2466_v57 = vadd.f32 %v4928_v17, %v2465_v52  ;;  %v2568_v44 = vld [vmem:[%s3471_s15 + $0xd8] sm:$0xff] }
 0x3dc   : > { %v2619_v49 = vmax.f32 %v2587_v37, 0.0  ;;  %v2588_v61 = vadd.f32 %v2556_v29, %v2474_v39  ;;  %v2566_v37 = vld [vmem:[%s3471_s15 + $0xc8] sm:$0xff] }
 0x3dd   : > { %v2617_v5 = vmax.f32 %v2585_v34, 0.0  ;;  %v2586_v63 = vadd.f32 %v2554_v32, %v2466_v57 }
 0x3de   : > { %2651 = vst.msk [vmem:[%s4940_s9 + $0x70] sm:$0xff] %vm5371_vm13, %v2619_v49  ;;  %v2620_v13 = vmax.f32 %v2588_v61, 0.0  ;;  %vm5386_vm13 = vmmov %vm5364_vm0 }
 0x3df   : > { %2649 = vst.msk [vmem:[%s4940_s9 + $0x60] sm:$0xff] %vm5372_vm10, %v2617_v5  ;;  %v2618_v11 = vmax.f32 %v2586_v63, 0.0  ;;  %vm5387_vm10 = vmmov %vm5364_vm0 }
 0x3e0   : > { %2652 = vst.msk [vmem:[%s4940_s9 + $0x78] sm:$0xff] %vm5373_vm3, %v2620_v13  ;;  %v2571_v13 = vld [vmem:[%s3471_s15 + $0xf0] sm:$0xff]  ;;  %vm5388_vm3 = vmmov %vm5364_vm0 }
 0x3e1   : > { %2650 = vst.msk [vmem:[%s4940_s9 + $0x68] sm:$0xff] %vm5374_vm8, %v2618_v11  ;;  %vm5389_vm8 = vmmov %vm5364_vm0 }
 0x3e7   : > { %v3113_v30 = vpop.f32.mrb[64].mxu0 }
 0x3e8   : > { %v2487_v42 = vadd.f32 %v3113_v30, %v4928_v17  ;;  %v2478_v3 = vpop.f32.mrb[65].mxu0 }
 0x3e9   : > { %v2479_v31 = vadd.f32 %v4928_v17, %v2478_v3  ;;  %v3114_v43 = vpop.f32.mrb[66].mxu0 }
 0x3ea   : > { %v2591_v4 = vadd.f32 %v2559_v56, %v2487_v42  ;;  %v2490_v22 = vadd.f32 %v3114_v43, %v4928_v17  ;;  %v2481_v2 = vpop.f32.mrb[67].mxu0  ;;  %v2569_v56 = vld [vmem:[%s3471_s15 + $0xe0] sm:$0xff] }
 0x3eb   : > { %v2589_v48 = vadd.f32 %v2557_v59, %v2479_v31  ;;  %v2482_v26 = vadd.f32 %v4928_v17, %v2481_v2  ;;  %v2572_v59 = vld [vmem:[%s3471_s15 + $0xf8] sm:$0xff] }
 0x3ec   : > { %v2623_v53 = vmax.f32 %v2591_v4, 0.0  ;;  %v2592_v51 = vadd.f32 %v2560_v16, %v2490_v22  ;;  %v2570_v4 = vld [vmem:[%s3471_s15 + $0xe8] sm:$0xff]  ;;  %s3243_s15 = scalar_lea.vmem %s5063_s11, 4096 }
 0x3ed   : > { %v2621_v55 = vmax.f32 %v2589_v48, 0.0  ;;  %v2590_v58 = vadd.f32 %v2558_v6, %v2482_v26  ;;  %p3244_p6 = scmp.ne.s32.totalorder %s5063_s11, %s3243_s15  ;;  %p3251_p10 = scmp.lt.s32.totalorder %s3249_s22, %s3243_s15 }
 0x3ee   : > { %2655 = vst.msk [vmem:[%s4940_s9 + $0x90] sm:$0xff] %vm5375_vm2, %v2623_v53  ;;  %v2624_v54 = vmax.f32 %v2592_v51, 0.0 }
 0x3ef   : > { %2653 = vst.msk [vmem:[%s4940_s9 + $0x80] sm:$0xff] %vm5376_vm14, %v2621_v55  ;;  %v2622_v23 = vmax.f32 %v2590_v58, 0.0  ;;  %p3245_p12 = pnand %p3244_p6, %p5390_p11  ;;  %p3252_p0 = por %p3251_p10, %p3250_p8 }
 0x3f0   : > { %2656 = vst.msk [vmem:[%s4940_s9 + $0x98] sm:$0xff] %vm5377_vm5, %v2624_v54 }
 0x3f1   : > { %2654 = vst.msk [vmem:[%s4940_s9 + $0x88] sm:$0xff] %vm5378_vm12, %v2622_v23  ;;  %p3246_p13 = pneg %p3245_p12 }
 0x3f3   : > { %p3253_p2 = pnand %p3252_p0, %p3246_p13 }
 0x3f7   : > { %v3117_v40 = vpop.f32.mrb[68].mxu0 }
 0x3f8   : > { %v2503_v14 = vadd.f32 %v3117_v40, %v4928_v17  ;;  %v2494_v7 = vpop.f32.mrb[69].mxu0 }
 0x3f9   : > { %v2495_v15 = vadd.f32 %v4928_v17, %v2494_v7  ;;  %v3118_v1 = vpop.f32.mrb[70].mxu0 }
 0x3fa   : > { %v2595_v10 = vadd.f32 %v2563_v20, %v2503_v14  ;;  %v2506_v36 = vadd.f32 %v3118_v1, %v4928_v17  ;;  %v2497_v12 = vpop.f32.mrb[71].mxu0 }
 0x3fb   : > { %v2593_v8 = vadd.f32 %v2561_v19, %v2495_v15  ;;  %v2498_v9 = vadd.f32 %v4928_v17, %v2497_v12 }
 0x3fc   : > { %v2627_v60 = vmax.f32 %v2595_v10, 0.0  ;;  %v2596_v47 = vadd.f32 %v2564_v0, %v2506_v36 }
 0x3fd   : > { %v2625_v38 = vmax.f32 %v2593_v8, 0.0  ;;  %v2594_v24 = vadd.f32 %v2562_v27, %v2498_v9 }
 0x3fe   : > { %2659 = vst.msk [vmem:[%s4940_s9 + $0xb0] sm:$0xff] %vm5379_vm4, %v2627_v60  ;;  %v2628_v35 = vmax.f32 %v2596_v47, 0.0 }
 0x3ff   : > { %2657 = vst.msk [vmem:[%s4940_s9 + $0xa0] sm:$0xff] %vm5364_vm0, %v2625_v38  ;;  %v2626_v45 = vmax.f32 %v2594_v24, 0.0 }
 0x400   : > { %2660 = vst.msk [vmem:[%s4940_s9 + $0xb8] sm:$0xff] %vm5380_vm7, %v2628_v35 }
 0x401   : > { %2658 = vst.msk [vmem:[%s4940_s9 + $0xa8] sm:$0xff] %vm5381_vm9, %v2626_v45 }
 0x407   : > { %v3121_v46 = vpop.f32.mrb[72].mxu0 }
 0x408   : > { %v2519_v28 = vadd.f32 %v3121_v46, %v4928_v17  ;;  %v2510_v18 = vpop.f32.mrb[73].mxu0 }
 0x409   : > { %v2511_v33 = vadd.f32 %v4928_v17, %v2510_v18  ;;  %v3122_v50 = vpop.f32.mrb[74].mxu0 }
 0x40a   : > { %v2599_v62 = vadd.f32 %v2567_v21, %v2519_v28  ;;  %v2522_v25 = vadd.f32 %v3122_v50, %v4928_v17  ;;  %v2513_v29 = vpop.f32.mrb[75].mxu0 }
 0x40b   : > { %v2597_v39 = vadd.f32 %v2565_v41, %v2511_v33  ;;  %v2514_v52 = vadd.f32 %v4928_v17, %v2513_v29 }
 0x40c   : > { %v2631_v32 = vmax.f32 %v2599_v62, 0.0  ;;  %v2600_v34 = vadd.f32 %v2568_v44, %v2522_v25 }
 0x40d   : > { %v2629_v57 = vmax.f32 %v2597_v39, 0.0  ;;  %v2598_v49 = vadd.f32 %v2566_v37, %v2514_v52 }
 0x40e   : > { %2663 = vst.msk [vmem:[%s4940_s9 + $0xd0] sm:$0xff] %vm5382_vm6, %v2631_v32  ;;  %v2632_v61 = vmax.f32 %v2600_v34, 0.0 }
 0x40f   : > { %2661 = vst.msk [vmem:[%s4940_s9 + $0xc0] sm:$0xff] %vm5383_vm11, %v2629_v57  ;;  %v2630_v5 = vmax.f32 %v2598_v49, 0.0 }
 0x410   : > { %2664 = vst.msk [vmem:[%s4940_s9 + $0xd8] sm:$0xff] %vm5384_vm1, %v2632_v61 }
 0x411   : > { %2662 = vst.msk [vmem:[%s4940_s9 + $0xc8] sm:$0xff] %vm5385_vm15, %v2630_v5 }
 0x417   : > { %v3125_v63 = vpop.f32.mrb[76].mxu0 }
 0x418   : > { %v2535_v11 = vadd.f32 %v3125_v63, %v4928_v17  ;;  %v2526_v30 = vpop.f32.mrb[77].mxu0 }
 0x419   : > { %v2527_v42 = vadd.f32 %v4928_v17, %v2526_v30  ;;  %v3126_v3 = vpop.f32.mrb[78].mxu0 }
 0x41a   : > { %v2603_v31 = vadd.f32 %v2571_v13, %v2535_v11  ;;  %v2538_v43 = vadd.f32 %v3126_v3, %v4928_v17  ;;  %v2529_v16 = vpop.f32.mrb[79].mxu0 }
 0x41b   : > { %v2601_v22 = vadd.f32 %v2569_v56, %v2527_v42  ;;  %v2530_v2 = vadd.f32 %v4928_v17, %v2529_v16 }
 0x41c   : > { %v2635_v6 = vmax.f32 %v2603_v31, 0.0  ;;  %v2604_v48 = vadd.f32 %v2572_v59, %v2538_v43 }
 0x41d   : > { %v2633_v26 = vmax.f32 %v2601_v22, 0.0  ;;  %v2602_v53 = vadd.f32 %v2570_v4, %v2530_v2 }
 0x41e   : > { %2667 = vst.msk [vmem:[%s4940_s9 + $0xf0] sm:$0xff] %vm5386_vm13, %v2635_v6  ;;  %v2636_v51 = vmax.f32 %v2604_v48, 0.0 }
 0x41f   : > { %2665 = vst.msk [vmem:[%s4940_s9 + $0xe0] sm:$0xff] %vm5387_vm10, %v2633_v26  ;;  %v2634_v17 = vmax.f32 %v2602_v53, 0.0 }
 0x420   : > { %2668 = vst.msk [vmem:[%s4940_s9 + $0xf8] sm:$0xff] %vm5388_vm3, %v2636_v51 }
 0x421   : > { %2666 = vst.msk [vmem:[%s4940_s9 + $0xe8] sm:$0xff] %vm5389_vm8, %v2634_v17 }
 0x422   : > { %3256 = shalt.err (!%p3253_p2)
}
 0x423   : > { %s3257_s19 = scalar_lea.hbm %s5061_s23, 4096  ;;  %s3261_s9 = scalar_lea.hbm %s5120_s7, 8192 }
 0x424   : > { %p3258_p4 = scmp.ne.s32.totalorder %s5061_s23, %s3257_s19  ;;  %p3262_p9 = scmp.lt.u32.totalorder %s5061_s23, %s5120_s7 }
 0x425   : > { %p3263_p1 = scmp.lt.u32.totalorder %s3261_s9, %s3257_s19  ;;  %p3265_p6 = scmp.lt.u32.totalorder %s3257_s19, %s5061_s23 }
 0x426   : > { %p3259_p5 = pnand %p3258_p4, %p5390_p11 }
 0x427   : > { %p3264_p3 = por %p3263_p1, %p3262_p9 }
 0x428   : > { %p3260_p7 = pneg %p3259_p5 }
 0x429   : > { %p3266_p12 = por %p3265_p6, %p3264_p3 }
 0x42b   : > { %p3267_p13 = pnand %p3266_p12, %p3260_p7 }
 0x42d   : > { %3270 = shalt.err (!%p3267_p13)
}
 0x42e   : > { %s3319_s8 = smov 128   ;;  %s3320_s15 = smov 8  }
 0x42f   : > { %3137 = dma.vmem_to_hbm [thread:$0]  (%p5390_p11), %s5063_s11, 4096, %s5061_s23, %s2670_s28, %s3319_s8, %s3319_s8, %s3320_s15  }
 0x430 PF: > { %s2698_s29 = sand.u32 1, %s3297_s24   ;;  %p5391_p8 = scmp.ne.s32.totalorder %s5145_s14, 0 }
 0x431   : > { %p5392_p10 = scmp.ge.s32.totalorder %s3309_s27, 2  ;;  %s2699_s20 = scalar_lea.sflag [#allocation5], %s2698_s29 }
 0x433   : > { %p3144_p0 = pnand %p5392_p10, %p5391_p8 }
 0x435   : > { %3292 = dma.done.wait (!%p3144_p0), %s2699_s20, 4096  }
 0x436   : > { %3294 = vsyncadd (!%p3144_p0), %s2699_s20, 4294963200  ;;  %p20_p2 = scmp.ge.s32.totalorder %s3386_s30, 4   ;;  %s5393_s24 = smov %s3301_s25 }
 0x437   : > { %s5394_s25 = smov %s3305_s26  ;;  %s5395_s26 = smov %s3398_s10 }
 0x438   : > { %s5396_s27 = smov %s3386_s30  ;;  %22 = sbr.rel (!%p20_p2) target bundleno = 5 (0x5), region = 93 }
 0x43f   :  { %2704 = vsyncpa [#allocation4], 1 }
 0x440   :  { %2706 = vsyncpa [#allocation4 + $0x1], 1 }
 0x441   :  { %2707 = vsyncpa [#allocation5], 1 }
 0x442   :  { %2709 = vsyncpa [#allocation5 + $0x1], 1 }

</bundles_post_ra>
